<compile_context>
chip_gen: v7x
topology: tpu7x:2x2x1
jax: 0.10.0
libtpu: 0.0.40
codegen_flags: <defaults>
</compile_context>

<pallas_src>
import numpy as np
import jax
import jax.numpy as jnp
from jax.experimental import pallas as pl
from jax.experimental.pallas import tpu as pltpu


# ---------------------------------------------------------------------------
# trace-time helpers (pure numpy / python)
# ---------------------------------------------------------------------------
def _divisors(n):
    return [d for d in range(1, n + 1) if n % d == 0]


def _derive_vmem_limit_bytes():
    """Per-kernel VMEM limit: ~3/4 of physical VMEM, capped at 100 MiB.
    (128 MiB v5e/v6e -> 96 MiB; 64 MiB per TensorCore on v7x -> 48 MiB.)"""
    try:
        phys = int(pltpu.get_tpu_info().vmem_capacity_bytes)
    except Exception:
        phys = 64 * 1024 * 1024            # conservative: v7x per-core VMEM
    return max(16 * 1024 * 1024, min(phys * 3 // 4, 100 * 1024 * 1024))


def _pool_selection_matrix(rows, width):
    """0/1 matrix S of shape (rows*width, (rows//2)*(width//2)).

    After the vertical and horizontal pair-max the pooled value of output pixel
    (j, i) sits at lane 2*j*width + 2*i; `p @ S` compacts those lanes densely
    with a single MXU matmul (preferred compaction on v6e/v7x)."""
    hh, wh = rows // 2, width // 2
    S = np.zeros((rows * width, hh * wh), dtype=np.float32)
    jj, ii = np.meshgrid(np.arange(hh), np.arange(wh), indexing="ij")
    S[(2 * jj * width + 2 * ii).ravel(), np.arange(hh * wh)] = 1.0
    return S


def _pool_compaction_schedule(rows, width):
    """Log-step schedule that packs the max-pooled lanes densely at the front.

    After the pair-max steps the pooled value of output pixel (j, i) lives at
    lane 2*j*width + 2*i of a rows*width lane vector.  Returns (shifts, masks)
    such that applying, in order,
        z = where(mask_k, <z with lane l taking lane l + shifts[k]>, z)
    moves those lanes, stably and collision-free, to the first
    (rows//2)*(width//2) lanes.  Pure numpy; verified by simulation here."""
    n = rows * width
    lanes = np.arange(n)
    keep = ((lanes // width) % 2 == 0) & ((lanes % width) % 2 == 0)
    kept = np.nonzero(keep)[0]
    dropped_before = np.cumsum(~keep) - (~keep)       # strictly before each lane
    total_shift = dropped_before[kept]                # left shift per kept lane

    steps = []
    cur = kept.copy()
    bit = 0
    while np.any(total_shift >> bit):
        amt = 1 << bit
        moving = ((total_shift >> bit) & 1).astype(bool)
        if moving.any():
            mask = np.zeros(n, dtype=np.float32)
            mask[cur[moving] - amt] = 1.0
            steps.append((amt, mask))
            cur = cur - np.where(moving, amt, 0)
        bit += 1

    # Trace-time proof: simulate the exact data movement on lane indices.
    sim = lanes.copy()
    for amt, mask in steps:
        shifted = np.roll(sim, -amt)                  # lane l takes lane l+amt
        sim = np.where(mask > 0, shifted, sim)
    assert np.array_equal(sim[: kept.size], kept), "bad compaction schedule"

    if not steps:                                     # already packed (tiny shapes)
        steps.append((1, np.zeros(n, dtype=np.float32)))

    shifts = tuple(int(s) for s, _ in steps)
    masks = np.stack([m for _, m in steps], axis=0)   # (n_steps, n) f32, tiny
    return shifts, masks


def _plan_tiling(B, C, H, W, x_bytes, w_bytes, helper_bytes_fn, budget):
    """Pick (pooled-row tile tH, batch block bB) so the per-step VMEM working
    set fits `budget`.  Prefers 128-lane-aligned output blocks, then the full
    image (always a legal block), then any in-budget divisor; raises instead of
    silently exceeding VMEM (fixes the old whole-image fallback)."""
    Hh, Wh = H // 2, W // 2

    def need(bB, tH):
        L, out_l = 2 * tH * W, tH * Wh
        in_blk = bB * C * L * x_bytes
        out_blk = bB * C * out_l * x_bytes
        consts = C * C * w_bytes + 2 * C * 4 + helper_bytes_fn(L, out_l)
        # inputs/outputs are double-buffered by the pipeline; conservatively
        # assume the constants are too (they may end up single-buffered).
        return 2 * in_blk + 2 * out_blk + 2 * consts

    divs = _divisors(Hh)
    aligned = [d for d in divs if (d * Wh) % 128 == 0]

    tH = None
    for d in sorted(aligned, reverse=True):           # lane-dense output blocks
        if need(1, d) <= budget:
            tH = d
            break
    if tH is None and need(1, Hh) <= budget:          # full image block
        tH = Hh
    if tH is None:
        for d in sorted(divs, reverse=True):          # unaligned but in budget
            if need(1, d) <= budget:
                tH = d
                break
    if tH is None:
        raise ValueError(
            f"Pool kernel tile for C={C}, H={H}, W={W} does not fit the VMEM "
            f"budget ({budget} bytes); raise vmem_budget_bytes or shrink the "
            "problem.")

    bB = 1
    if tH == Hh:                                      # small image: batch images
        for d in sorted(_divisors(B), reverse=True):
            if d <= 8 and need(d, tH) <= budget:
                bB = d
                break
    return tH, bB


# ---------------------------------------------------------------------------
# kernel
# ---------------------------------------------------------------------------
def _make_pool_kernel(width, out_lanes, batch_block, use_selection, shifts):
    """width: input-row width W.  After the two pair-max steps the pooled value
    of output pixel (j, i) sits at lane 2*j*width + 2*i of the tile."""

    def shift_from_right(v, s):
        # lane l takes the value of lane l + s; vacated tail lanes become zero
        # (those lanes are never selected by the pooling pattern).
        if s == 0:
            return v
        pad = jnp.zeros((v.shape[0], s), v.dtype)
        return jnp.concatenate([v[:, s:], pad], axis=1)

    def kernel(x_ref, scale_ref, shift_ref, w_ref, helper_ref, o_ref):
        scale = scale_ref[...]                         # (C, 1) f32
        shift = shift_ref[...]                         # (C, 1) f32
        w = w_ref[...]                                 # (C, C) f32 or bf16
        if use_selection:
            sel = helper_ref[...]                      # (in_lanes, out_lanes) 0/1
        else:
            # Hoisted once per grid step (not per image in the block).
            masks = [helper_ref[k:k + 1, :] != 0.0 for k in range(len(shifts))]

        for b in range(batch_block):                   # static unroll, small
            x = x_ref[b].astype(jnp.float32)           # (C, in_lanes)
            # BatchNorm (inference, folded to scale/shift) + ReLU   -> VPU.
            y = jnp.maximum(x * scale + shift, 0.0)
            # 1x1 conv == channel-mixing matmul                      -> MXU.
            z = jnp.dot(w, y.astype(w.dtype), preferred_element_type=jnp.float32)
            # Dropout(0.2): identity in eval mode.
            # MaxPool2d(2): vertical pair-max (rows r, r+1) ...
            z = jnp.maximum(z, shift_from_right(z, width))
            # ... horizontal pair-max (cols c, c+1).  Pooled value of output
            # pixel (j, i) now sits at lane 2*j*width + 2*i.
            z = jnp.maximum(z, shift_from_right(z, 1))
            if use_selection:
                # Dense lane compaction as ONE matmul against a 0/1 selection
                # matrix: moves the work to the mostly-idle MXU (v6e/v7x).
                out = jnp.dot(z.astype(sel.dtype), sel,
                              preferred_element_type=jnp.float32)
            else:
                # Exact log-step shift+select compaction (VPU only): used for
                # the exact small-C path and recommended on v5e.
                for k, s in enumerate(shifts):
                    z = jnp.where(masks[k], shift_from_right(z, s), z)
                out = z[:, :out_lanes]
            o_ref[b] = out.astype(o_ref.dtype)

    return kernel


# ---------------------------------------------------------------------------
# wrapper
# ---------------------------------------------------------------------------
def pool_forward(x, gamma, beta, running_mean, running_var, conv_w, *,
                 eps=1e-5, use_selection_compaction=None,
                 vmem_budget_bytes=None, vmem_limit_bytes=None):
    """Eval-mode Pool forward (BN running stats, Dropout == identity).

    x: (B, C, H, W) NCHW.  Returns (B, C, H//2, W//2).

    use_selection_compaction: None -> auto (True when C >= 64).  On v5e
      (197 TF/s MXU, 3 XLUs) prefer False; on v6e/v7x prefer True.
    vmem_budget_bytes: override the per-step working-set budget (e.g. for
      per-generation tuning or to force spatial tiling)."""
    B, C, H, W = x.shape
    assert H % 2 == 0 and W % 2 == 0, "MaxPool2d(2) needs even H and W"
    assert conv_w.shape == (C, C, 1, 1)
    for p in (gamma, beta, running_mean, running_var):
        assert p.shape == (C,)
    Hh, Wh = H // 2, W // 2

    # Free layout view (no HBM traffic): spatial pixels on lanes, channels on
    # sublanes, native NCHW order.
    x_flat = x.reshape(B, C, H * W)

    # Fold inference BatchNorm into a per-channel scale/shift.
    scale1 = (gamma / jnp.sqrt(running_var + eps)).astype(jnp.float32)
    shift1 = (beta - running_mean * scale1).astype(jnp.float32)
    scale = scale1.reshape(C, 1)
    shift = shift1.reshape(C, 1)

    # 1x1 conv weight as (C_out, C_in): bf16 operands (f32 accumulation) once
    # the channel contraction is big enough to be MXU-worthy, exact f32 below.
    use_bf16 = C >= 64
    w_dtype = jnp.bfloat16 if use_bf16 else jnp.float32
    w = conv_w.reshape(C, C).astype(w_dtype)

    if use_selection_compaction is None:
        use_selection_compaction = use_bf16            # v6e/v7x default
    sel_dtype = w_dtype
    sel_bytes = 2 if sel_dtype == jnp.bfloat16 else 4
    x_bytes = x.dtype.itemsize
    w_bytes = 2 if use_bf16 else 4

    if use_selection_compaction:
        helper_bytes_fn = lambda L, out_l: L * out_l * sel_bytes
    else:
        helper_bytes_fn = (
            lambda L, out_l: (int(np.ceil(np.log2(max(L, 2)))) + 1) * L * 4)

    vmem_limit = int(vmem_limit_bytes or _derive_vmem_limit_bytes())
    budget = int(vmem_budget_bytes or (vmem_limit * 8) // 10)

    tH, bB = _plan_tiling(B, C, H, W, x_bytes, w_bytes, helper_bytes_fn, budget)
    n_tiles = Hh // tH
    in_lanes = 2 * tH * W
    out_lanes = tH * Wh

    if use_selection_compaction:
        helper = jnp.asarray(_pool_selection_matrix(2 * tH, W), dtype=sel_dtype)
        shifts = ()
    else:
        # Masks kept as f32 for maximally robust lowering; the != 0 compare is
        # hoisted once per grid step inside the kernel.
        shifts, masks = _pool_compaction_schedule(2 * tH, W)
        helper = jnp.asarray(masks)

    kernel = _make_pool_kernel(W, out_lanes, bB, use_selection_compaction, shifts)

    sel_flops = (2 * C * in_lanes * out_lanes * n_tiles * B
                 if use_selection_compaction else 0)
    cost = pl.CostEstimate(
        flops=int(2 * C * C * H * W * B + sel_flops),
        transcendentals=0,
        bytes_accessed=int((B * C * H * W + B * C * Hh * Wh) * x_bytes
                           + C * C * w_bytes + 8 * C
                           + helper.size * helper.dtype.itemsize),
    )

    grid = (B // bB, n_tiles)
    data_spec = pl.BlockSpec((bB, C, in_lanes), lambda b, t: (b, 0, t))
    out_spec = pl.BlockSpec((bB, C, out_lanes), lambda b, t: (b, 0, t))
    const_specs = [
        ((C, 1), lambda b, t: (0, 0)),
        ((C, 1), lambda b, t: (0, 0)),
        ((C, C), lambda b, t: (0, 0)),
        (helper.shape, lambda b, t: (0, 0)),
    ]

    def build(single_buffer_consts):
        if single_buffer_consts and hasattr(pl, "Buffered"):
            cspecs = [pl.BlockSpec(s, m, pipeline_mode=pl.Buffered(1))
                      for s, m in const_specs]
        else:
            cspecs = [pl.BlockSpec(s, m) for s, m in const_specs]
        return pl.pallas_call(
            kernel,
            out_shape=jax.ShapeDtypeStruct((B, C, Hh * Wh), x.dtype),
            grid=grid,
            in_specs=[data_spec] + cspecs,
            out_specs=out_spec,
            compiler_params=pltpu.CompilerParams(
                dimension_semantics=("parallel", "parallel"),
                vmem_limit_bytes=vmem_limit),
            cost_estimate=cost,
        )

    args = (x_flat, scale, shift, w, helper)
    try:
        # Constant-index operands single-buffered (saves VMEM for large C);
        # fall back transparently if this JAX version rejects Buffered(1).
        out = build(True)(*args)
    except Exception:
        out = build(False)(*args)

    return out.reshape(B, C, Hh, Wh)


# ---------------------------------------------------------------------------
# plain-JAX reference (eval-mode PyTorch forward)
# ---------------------------------------------------------------------------
def pool_reference(x, gamma, beta, running_mean, running_var, conv_w, eps=1e-5):
    C = x.shape[1]
    scale = gamma / jnp.sqrt(running_var + eps)
    shift = beta - running_mean * scale
    y = jnp.maximum(x * scale[None, :, None, None] + shift[None, :, None, None],
                    0.0)
    w = conv_w.reshape(C, C)
    z = jnp.einsum("oc,bchw->bohw", w, y, precision=jax.lax.Precision.HIGHEST)
    B, Co, H, W = z.shape
    z = z.reshape(B, Co, H // 2, 2, W // 2, 2)
    return z.max(axis=(3, 5))


if __name__ == "__main__":
    key = jax.random.PRNGKey(0)

    # --- test 1: small exact path (f32 conv + shift/select compaction) -----
    B, C, H, W = 2, 4, 16, 16
    kx, kg, kb, km, kv, kw, key = jax.random.split(key, 7)
    x = jax.random.normal(kx, (B, C, H, W), jnp.float32)
    gamma = 1.0 + 0.1 * jax.random.normal(kg, (C,), jnp.float32)
    beta = 0.1 * jax.random.normal(kb, (C,), jnp.float32)
    running_mean = 0.1 * jax.random.normal(km, (C,), jnp.float32)
    running_var = jax.random.uniform(kv, (C,), jnp.float32,
                                     minval=0.5, maxval=1.5)
    conv_w = jax.random.normal(kw, (C, C, 1, 1), jnp.float32) / jnp.sqrt(C)

    out = pool_forward(x, gamma, beta, running_mean, running_var, conv_w)
    out = jax.block_until_ready(out)
    ref = pool_reference(x, gamma, beta, running_mean, running_var, conv_w)
    assert out.shape == (B, C, H // 2, W // 2), out.shape
    # Tolerance covers possible reduced-precision f32 matmul lowering paths;
    # any real layout/pooling bug produces O(1) errors.
    err1 = float(jnp.max(jnp.abs(out - ref)))
    assert jnp.allclose(out, ref, rtol=2e-2, atol=2e-2), err1

    # --- test 2: bf16 conv + selection-matrix compaction, tiled grid -------
    B2, C2, H2, W2 = 1, 128, 32, 32
    kx, kg, kb, km, kv, kw, key = jax.random.split(key, 7)
    x2 = jax.random.normal(kx, (B2, C2, H2, W2), jnp.float32)
    gamma2 = 1.0 + 0.1 * jax.random.normal(kg, (C2,), jnp.float32)
    beta2 = 0.1 * jax.random.normal(kb, (C2,), jnp.float32)
    mean2 = 0.1 * jax.random.normal(km, (C2,), jnp.float32)
    var2 = jax.random.uniform(kv, (C2,), jnp.float32, minval=0.5, maxval=1.5)
    w2 = jax.random.normal(kw, (C2, C2, 1, 1), jnp.float32) / jnp.sqrt(C2)

    # Small explicit budget forces the spatial-tiling path (n_tiles > 1).
    out2 = pool_forward(x2, gamma2, beta2, mean2, var2, w2,
                        vmem_budget_bytes=1 << 20)
    out2 = jax.block_until_ready(out2)
    ref2 = pool_reference(x2, gamma2, beta2, mean2, var2, w2)
    assert out2.shape == (B2, C2, H2 // 2, W2 // 2), out2.shape
    err2 = float(jnp.max(jnp.abs(out2 - ref2)))
    assert jnp.allclose(out2, ref2, rtol=5e-2, atol=5e-2), err2

    print("KERNEL_OK")
</pallas_src>

<mosaic_0001>
module attributes {stable_mosaic.version = 11 : i64} {
  func.func @kernel(%arg0: i32, %arg1: i32, %arg2: memref<2x4x256xf32, #tpu.memory_space<vmem>>, %arg3: memref<4x1xf32, #tpu.memory_space<vmem>>, %arg4: memref<4x1xf32, #tpu.memory_space<vmem>>, %arg5: memref<4x4xf32, #tpu.memory_space<vmem>>, %arg6: memref<8x256xf32, #tpu.memory_space<vmem>>, %arg7: memref<2x4x64xf32, #tpu.memory_space<vmem>>) attributes {dimension_semantics = [#tpu.dimension_semantics<parallel>, #tpu.dimension_semantics<parallel>], iteration_bounds = array<i64: 1, 1>, scalar_prefetch = 0 : i64, scratch_operands = 0 : i64, tpu.core_type = #tpu.core_type<tc>, window_params = [{transform_indices = @transform_0, window_bounds = array<i64: 2, 4, 256>}, {pipeline_mode = #tpu.pipeline_mode<synchronous>, transform_indices = @transform_1, window_bounds = array<i64: 4, 1>}, {pipeline_mode = #tpu.pipeline_mode<synchronous>, transform_indices = @transform_2, window_bounds = array<i64: 4, 1>}, {pipeline_mode = #tpu.pipeline_mode<synchronous>, transform_indices = @transform_3, window_bounds = array<i64: 4, 4>}, {pipeline_mode = #tpu.pipeline_mode<synchronous>, transform_indices = @transform_4, window_bounds = array<i64: 8, 256>}, {transform_indices = @transform_5, window_bounds = array<i64: 2, 4, 64>}]} {
    %c0 = arith.constant 0 : index
    %c0_0 = arith.constant 0 : index
    %0 = vector.load %arg3[%c0, %c0_0] : memref<4x1xf32, #tpu.memory_space<vmem>>, vector<4x1xf32>
    %c0_1 = arith.constant 0 : index
    %c0_2 = arith.constant 0 : index
    %1 = vector.load %arg4[%c0_1, %c0_2] : memref<4x1xf32, #tpu.memory_space<vmem>>, vector<4x1xf32>
    %c0_3 = arith.constant 0 : index
    %c0_4 = arith.constant 0 : index
    %2 = vector.load %arg5[%c0_3, %c0_4] : memref<4x4xf32, #tpu.memory_space<vmem>>, vector<4x4xf32>
    %c0_5 = arith.constant 0 : index
    %c0_6 = arith.constant 0 : index
    %3 = vector.load %arg6[%c0_5, %c0_6] : memref<8x256xf32, #tpu.memory_space<vmem>>, vector<1x256xf32>
    %cst = arith.constant 0.000000e+00 : f32
    %4 = vector.broadcast %cst : f32 to vector<1x256xf32>
    %5 = arith.cmpf one, %3, %4 : vector<1x256xf32>
    %c1 = arith.constant 1 : index
    %c0_7 = arith.constant 0 : index
    %6 = vector.load %arg6[%c1, %c0_7] : memref<8x256xf32, #tpu.memory_space<vmem>>, vector<1x256xf32>
    %cst_8 = arith.constant 0.000000e+00 : f32
    %7 = vector.broadcast %cst_8 : f32 to vector<1x256xf32>
    %8 = arith.cmpf one, %6, %7 : vector<1x256xf32>
    %c2 = arith.constant 2 : index
    %c0_9 = arith.constant 0 : index
    %9 = vector.load %arg6[%c2, %c0_9] : memref<8x256xf32, #tpu.memory_space<vmem>>, vector<1x256xf32>
    %cst_10 = arith.constant 0.000000e+00 : f32
    %10 = vector.broadcast %cst_10 : f32 to vector<1x256xf32>
    %11 = arith.cmpf one, %9, %10 : vector<1x256xf32>
    %c3 = arith.constant 3 : index
    %c0_11 = arith.constant 0 : index
    %12 = vector.load %arg6[%c3, %c0_11] : memref<8x256xf32, #tpu.memory_space<vmem>>, vector<1x256xf32>
    %cst_12 = arith.constant 0.000000e+00 : f32
    %13 = vector.broadcast %cst_12 : f32 to vector<1x256xf32>
    %14 = arith.cmpf one, %12, %13 : vector<1x256xf32>
    %c4 = arith.constant 4 : index
    %c0_13 = arith.constant 0 : index
    %15 = vector.load %arg6[%c4, %c0_13] : memref<8x256xf32, #tpu.memory_space<vmem>>, vector<1x256xf32>
    %cst_14 = arith.constant 0.000000e+00 : f32
    %16 = vector.broadcast %cst_14 : f32 to vector<1x256xf32>
    %17 = arith.cmpf one, %15, %16 : vector<1x256xf32>
    %c5 = arith.constant 5 : index
    %c0_15 = arith.constant 0 : index
    %18 = vector.load %arg6[%c5, %c0_15] : memref<8x256xf32, #tpu.memory_space<vmem>>, vector<1x256xf32>
    %cst_16 = arith.constant 0.000000e+00 : f32
    %19 = vector.broadcast %cst_16 : f32 to vector<1x256xf32>
    %20 = arith.cmpf one, %18, %19 : vector<1x256xf32>
    %c6 = arith.constant 6 : index
    %c0_17 = arith.constant 0 : index
    %21 = vector.load %arg6[%c6, %c0_17] : memref<8x256xf32, #tpu.memory_space<vmem>>, vector<1x256xf32>
    %cst_18 = arith.constant 0.000000e+00 : f32
    %22 = vector.broadcast %cst_18 : f32 to vector<1x256xf32>
    %23 = arith.cmpf one, %21, %22 : vector<1x256xf32>
    %c7 = arith.constant 7 : index
    %c0_19 = arith.constant 0 : index
    %24 = vector.load %arg6[%c7, %c0_19] : memref<8x256xf32, #tpu.memory_space<vmem>>, vector<1x256xf32>
    %cst_20 = arith.constant 0.000000e+00 : f32
    %25 = vector.broadcast %cst_20 : f32 to vector<1x256xf32>
    %26 = arith.cmpf one, %24, %25 : vector<1x256xf32>
    %c0_21 = arith.constant 0 : index
    %c0_22 = arith.constant 0 : index
    %c0_23 = arith.constant 0 : index
    %27 = vector.load %arg2[%c0_21, %c0_22, %c0_23] : memref<2x4x256xf32, #tpu.memory_space<vmem>>, vector<1x4x256xf32>
    %28 = vector.shape_cast %27 : vector<1x4x256xf32> to vector<4x256xf32>
    %29 = vector.broadcast %0 : vector<4x1xf32> to vector<4x256xf32>
    %30 = arith.mulf %28, %29 : vector<4x256xf32>
    %31 = vector.broadcast %1 : vector<4x1xf32> to vector<4x256xf32>
    %32 = arith.addf %30, %31 : vector<4x256xf32>
    %cst_24 = arith.constant 0.000000e+00 : f32
    %33 = vector.broadcast %cst_24 : f32 to vector<4x256xf32>
    %34 = arith.maximumf %32, %33 : vector<4x256xf32>
    %cst_25 = arith.constant dense<0.000000e+00> : vector<4x256xf32>
    %35 = tpu.matmul %2, %34, %cst_25 {dimension_numbers = #tpu.dot_dimension_numbers<[1], [0], [0], [1], [0, 0, 1, 1], [], []>} : vector<4x4xf32>, vector<4x256xf32>, vector<4x256xf32> -> vector<4x256xf32>
    %cst_26 = arith.constant 0.000000e+00 : f32
    %36 = vector.broadcast %cst_26 : f32 to vector<4x16xf32>
    %37 = vector.extract_strided_slice %35 {offsets = [0, 16], sizes = [4, 240], strides = [1, 1]} : vector<4x256xf32> to vector<4x240xf32>
    %38 = tpu.concatenate %37, %36 in 1 : vector<4x240xf32>, vector<4x16xf32> -> vector<4x256xf32>
    %39 = arith.maximumf %35, %38 : vector<4x256xf32>
    %cst_27 = arith.constant 0.000000e+00 : f32
    %40 = vector.broadcast %cst_27 : f32 to vector<4x1xf32>
    %41 = vector.extract_strided_slice %39 {offsets = [0, 1], sizes = [4, 255], strides = [1, 1]} : vector<4x256xf32> to vector<4x255xf32>
    %42 = tpu.concatenate %41, %40 in 1 : vector<4x255xf32>, vector<4x1xf32> -> vector<4x256xf32>
    %43 = arith.maximumf %39, %42 : vector<4x256xf32>
    %cst_28 = arith.constant 0.000000e+00 : f32
    %44 = vector.broadcast %cst_28 : f32 to vector<4x1xf32>
    %45 = vector.extract_strided_slice %43 {offsets = [0, 1], sizes = [4, 255], strides = [1, 1]} : vector<4x256xf32> to vector<4x255xf32>
    %46 = tpu.concatenate %45, %44 in 1 : vector<4x255xf32>, vector<4x1xf32> -> vector<4x256xf32>
    %47 = vector.shape_cast %5 : vector<1x256xi1> to vector<1x256xi1>
    %48 = vector.broadcast %47 : vector<1x256xi1> to vector<4x256xi1>
    %49 = arith.select %48, %46, %43 : vector<4x256xi1>, vector<4x256xf32>
    %cst_29 = arith.constant 0.000000e+00 : f32
    %50 = vector.broadcast %cst_29 : f32 to vector<4x2xf32>
    %51 = vector.extract_strided_slice %49 {offsets = [0, 2], sizes = [4, 254], strides = [1, 1]} : vector<4x256xf32> to vector<4x254xf32>
    %52 = tpu.concatenate %51, %50 in 1 : vector<4x254xf32>, vector<4x2xf32> -> vector<4x256xf32>
    %53 = vector.shape_cast %8 : vector<1x256xi1> to vector<1x256xi1>
    %54 = vector.broadcast %53 : vector<1x256xi1> to vector<4x256xi1>
    %55 = arith.select %54, %52, %49 : vector<4x256xi1>, vector<4x256xf32>
    %cst_30 = arith.constant 0.000000e+00 : f32
    %56 = vector.broadcast %cst_30 : f32 to vector<4x4xf32>
    %57 = vector.extract_strided_slice %55 {offsets = [0, 4], sizes = [4, 252], strides = [1, 1]} : vector<4x256xf32> to vector<4x252xf32>
    %58 = tpu.concatenate %57, %56 in 1 : vector<4x252xf32>, vector<4x4xf32> -> vector<4x256xf32>
    %59 = vector.shape_cast %11 : vector<1x256xi1> to vector<1x256xi1>
    %60 = vector.broadcast %59 : vector<1x256xi1> to vector<4x256xi1>
    %61 = arith.select %60, %58, %55 : vector<4x256xi1>, vector<4x256xf32>
    %cst_31 = arith.constant 0.000000e+00 : f32
    %62 = vector.broadcast %cst_31 : f32 to vector<4x8xf32>
    %63 = vector.extract_strided_slice %61 {offsets = [0, 8], sizes = [4, 248], strides = [1, 1]} : vector<4x256xf32> to vector<4x248xf32>
    %64 = tpu.concatenate %63, %62 in 1 : vector<4x248xf32>, vector<4x8xf32> -> vector<4x256xf32>
    %65 = vector.shape_cast %14 : vector<1x256xi1> to vector<1x256xi1>
    %66 = vector.broadcast %65 : vector<1x256xi1> to vector<4x256xi1>
    %67 = arith.select %66, %64, %61 : vector<4x256xi1>, vector<4x256xf32>
    %cst_32 = arith.constant 0.000000e+00 : f32
    %68 = vector.broadcast %cst_32 : f32 to vector<4x16xf32>
    %69 = vector.extract_strided_slice %67 {offsets = [0, 16], sizes = [4, 240], strides = [1, 1]} : vector<4x256xf32> to vector<4x240xf32>
    %70 = tpu.concatenate %69, %68 in 1 : vector<4x240xf32>, vector<4x16xf32> -> vector<4x256xf32>
    %71 = vector.shape_cast %17 : vector<1x256xi1> to vector<1x256xi1>
    %72 = vector.broadcast %71 : vector<1x256xi1> to vector<4x256xi1>
    %73 = arith.select %72, %70, %67 : vector<4x256xi1>, vector<4x256xf32>
    %cst_33 = arith.constant 0.000000e+00 : f32
    %74 = vector.broadcast %cst_33 : f32 to vector<4x32xf32>
    %75 = vector.extract_strided_slice %73 {offsets = [0, 32], sizes = [4, 224], strides = [1, 1]} : vector<4x256xf32> to vector<4x224xf32>
    %76 = tpu.concatenate %75, %74 in 1 : vector<4x224xf32>, vector<4x32xf32> -> vector<4x256xf32>
    %77 = vector.shape_cast %20 : vector<1x256xi1> to vector<1x256xi1>
    %78 = vector.broadcast %77 : vector<1x256xi1> to vector<4x256xi1>
    %79 = arith.select %78, %76, %73 : vector<4x256xi1>, vector<4x256xf32>
    %cst_34 = arith.constant 0.000000e+00 : f32
    %80 = vector.broadcast %cst_34 : f32 to vector<4x64xf32>
    %81 = vector.extract_strided_slice %79 {offsets = [0, 64], sizes = [4, 192], strides = [1, 1]} : vector<4x256xf32> to vector<4x192xf32>
    %82 = tpu.concatenate %81, %80 in 1 : vector<4x192xf32>, vector<4x64xf32> -> vector<4x256xf32>
    %83 = vector.shape_cast %23 : vector<1x256xi1> to vector<1x256xi1>
    %84 = vector.broadcast %83 : vector<1x256xi1> to vector<4x256xi1>
    %85 = arith.select %84, %82, %79 : vector<4x256xi1>, vector<4x256xf32>
    %cst_35 = arith.constant 0.000000e+00 : f32
    %86 = vector.broadcast %cst_35 : f32 to vector<4x128xf32>
    %87 = vector.extract_strided_slice %85 {offsets = [0, 128], sizes = [4, 128], strides = [1, 1]} : vector<4x256xf32> to vector<4x128xf32>
    %88 = tpu.concatenate %87, %86 in 1 : vector<4x128xf32>, vector<4x128xf32> -> vector<4x256xf32>
    %89 = vector.shape_cast %26 : vector<1x256xi1> to vector<1x256xi1>
    %90 = vector.broadcast %89 : vector<1x256xi1> to vector<4x256xi1>
    %91 = arith.select %90, %88, %85 : vector<4x256xi1>, vector<4x256xf32>
    %92 = vector.extract_strided_slice %91 {offsets = [0, 0], sizes = [4, 64], strides = [1, 1]} : vector<4x256xf32> to vector<4x64xf32>
    %c0_36 = arith.constant 0 : index
    %c0_37 = arith.constant 0 : index
    %c0_38 = arith.constant 0 : index
    %93 = vector.load %arg7[%c0_36, %c0_37, %c0_38] : memref<2x4x64xf32, #tpu.memory_space<vmem>>, vector<1x4x64xf32>
    %94 = vector.shape_cast %93 : vector<1x4x64xf32> to vector<4x64xf32>
    %95 = vector.shape_cast %92 : vector<4x64xf32> to vector<1x4x64xf32>
    tpu.vector_store %arg7[%c0_36, %c0_37, %c0_38], %95 {strides = array<i32>} : memref<2x4x64xf32, #tpu.memory_space<vmem>>, vector<1x4x64xf32>,
    %c1_39 = arith.constant 1 : index
    %c0_40 = arith.constant 0 : index
    %c0_41 = arith.constant 0 : index
    %96 = vector.load %arg2[%c1_39, %c0_40, %c0_41] : memref<2x4x256xf32, #tpu.memory_space<vmem>>, vector<1x4x256xf32>
    %97 = vector.shape_cast %96 : vector<1x4x256xf32> to vector<4x256xf32>
    %98 = vector.broadcast %0 : vector<4x1xf32> to vector<4x256xf32>
    %99 = arith.mulf %97, %98 : vector<4x256xf32>
    %100 = vector.broadcast %1 : vector<4x1xf32> to vector<4x256xf32>
    %101 = arith.addf %99, %100 : vector<4x256xf32>
    %cst_42 = arith.constant 0.000000e+00 : f32
    %102 = vector.broadcast %cst_42 : f32 to vector<4x256xf32>
    %103 = arith.maximumf %101, %102 : vector<4x256xf32>
    %cst_43 = arith.constant dense<0.000000e+00> : vector<4x256xf32>
    %104 = tpu.matmul %2, %103, %cst_43 {dimension_numbers = #tpu.dot_dimension_numbers<[1], [0], [0], [1], [0, 0, 1, 1], [], []>} : vector<4x4xf32>, vector<4x256xf32>, vector<4x256xf32> -> vector<4x256xf32>
    %cst_44 = arith.constant 0.000000e+00 : f32
    %105 = vector.broadcast %cst_44 : f32 to vector<4x16xf32>
    %106 = vector.extract_strided_slice %104 {offsets = [0, 16], sizes = [4, 240], strides = [1, 1]} : vector<4x256xf32> to vector<4x240xf32>
    %107 = tpu.concatenate %106, %105 in 1 : vector<4x240xf32>, vector<4x16xf32> -> vector<4x256xf32>
    %108 = arith.maximumf %104, %107 : vector<4x256xf32>
    %cst_45 = arith.constant 0.000000e+00 : f32
    %109 = vector.broadcast %cst_45 : f32 to vector<4x1xf32>
    %110 = vector.extract_strided_slice %108 {offsets = [0, 1], sizes = [4, 255], strides = [1, 1]} : vector<4x256xf32> to vector<4x255xf32>
    %111 = tpu.concatenate %110, %109 in 1 : vector<4x255xf32>, vector<4x1xf32> -> vector<4x256xf32>
    %112 = arith.maximumf %108, %111 : vector<4x256xf32>
    %cst_46 = arith.constant 0.000000e+00 : f32
    %113 = vector.broadcast %cst_46 : f32 to vector<4x1xf32>
    %114 = vector.extract_strided_slice %112 {offsets = [0, 1], sizes = [4, 255], strides = [1, 1]} : vector<4x256xf32> to vector<4x255xf32>
    %115 = tpu.concatenate %114, %113 in 1 : vector<4x255xf32>, vector<4x1xf32> -> vector<4x256xf32>
    %116 = vector.shape_cast %5 : vector<1x256xi1> to vector<1x256xi1>
    %117 = vector.broadcast %116 : vector<1x256xi1> to vector<4x256xi1>
    %118 = arith.select %117, %115, %112 : vector<4x256xi1>, vector<4x256xf32>
    %cst_47 = arith.constant 0.000000e+00 : f32
    %119 = vector.broadcast %cst_47 : f32 to vector<4x2xf32>
    %120 = vector.extract_strided_slice %118 {offsets = [0, 2], sizes = [4, 254], strides = [1, 1]} : vector<4x256xf32> to vector<4x254xf32>
    %121 = tpu.concatenate %120, %119 in 1 : vector<4x254xf32>, vector<4x2xf32> -> vector<4x256xf32>
    %122 = vector.shape_cast %8 : vector<1x256xi1> to vector<1x256xi1>
    %123 = vector.broadcast %122 : vector<1x256xi1> to vector<4x256xi1>
    %124 = arith.select %123, %121, %118 : vector<4x256xi1>, vector<4x256xf32>
    %cst_48 = arith.constant 0.000000e+00 : f32
    %125 = vector.broadcast %cst_48 : f32 to vector<4x4xf32>
    %126 = vector.extract_strided_slice %124 {offsets = [0, 4], sizes = [4, 252], strides = [1, 1]} : vector<4x256xf32> to vector<4x252xf32>
    %127 = tpu.concatenate %126, %125 in 1 : vector<4x252xf32>, vector<4x4xf32> -> vector<4x256xf32>
    %128 = vector.shape_cast %11 : vector<1x256xi1> to vector<1x256xi1>
    %129 = vector.broadcast %128 : vector<1x256xi1> to vector<4x256xi1>
    %130 = arith.select %129, %127, %124 : vector<4x256xi1>, vector<4x256xf32>
    %cst_49 = arith.constant 0.000000e+00 : f32
    %131 = vector.broadcast %cst_49 : f32 to vector<4x8xf32>
    %132 = vector.extract_strided_slice %130 {offsets = [0, 8], sizes = [4, 248], strides = [1, 1]} : vector<4x256xf32> to vector<4x248xf32>
    %133 = tpu.concatenate %132, %131 in 1 : vector<4x248xf32>, vector<4x8xf32> -> vector<4x256xf32>
    %134 = vector.shape_cast %14 : vector<1x256xi1> to vector<1x256xi1>
    %135 = vector.broadcast %134 : vector<1x256xi1> to vector<4x256xi1>
    %136 = arith.select %135, %133, %130 : vector<4x256xi1>, vector<4x256xf32>
    %cst_50 = arith.constant 0.000000e+00 : f32
    %137 = vector.broadcast %cst_50 : f32 to vector<4x16xf32>
    %138 = vector.extract_strided_slice %136 {offsets = [0, 16], sizes = [4, 240], strides = [1, 1]} : vector<4x256xf32> to vector<4x240xf32>
    %139 = tpu.concatenate %138, %137 in 1 : vector<4x240xf32>, vector<4x16xf32> -> vector<4x256xf32>
    %140 = vector.shape_cast %17 : vector<1x256xi1> to vector<1x256xi1>
    %141 = vector.broadcast %140 : vector<1x256xi1> to vector<4x256xi1>
    %142 = arith.select %141, %139, %136 : vector<4x256xi1>, vector<4x256xf32>
    %cst_51 = arith.constant 0.000000e+00 : f32
    %143 = vector.broadcast %cst_51 : f32 to vector<4x32xf32>
    %144 = vector.extract_strided_slice %142 {offsets = [0, 32], sizes = [4, 224], strides = [1, 1]} : vector<4x256xf32> to vector<4x224xf32>
    %145 = tpu.concatenate %144, %143 in 1 : vector<4x224xf32>, vector<4x32xf32> -> vector<4x256xf32>
    %146 = vector.shape_cast %20 : vector<1x256xi1> to vector<1x256xi1>
    %147 = vector.broadcast %146 : vector<1x256xi1> to vector<4x256xi1>
    %148 = arith.select %147, %145, %142 : vector<4x256xi1>, vector<4x256xf32>
    %cst_52 = arith.constant 0.000000e+00 : f32
    %149 = vector.broadcast %cst_52 : f32 to vector<4x64xf32>
    %150 = vector.extract_strided_slice %148 {offsets = [0, 64], sizes = [4, 192], strides = [1, 1]} : vector<4x256xf32> to vector<4x192xf32>
    %151 = tpu.concatenate %150, %149 in 1 : vector<4x192xf32>, vector<4x64xf32> -> vector<4x256xf32>
    %152 = vector.shape_cast %23 : vector<1x256xi1> to vector<1x256xi1>
    %153 = vector.broadcast %152 : vector<1x256xi1> to vector<4x256xi1>
    %154 = arith.select %153, %151, %148 : vector<4x256xi1>, vector<4x256xf32>
    %cst_53 = arith.constant 0.000000e+00 : f32
    %155 = vector.broadcast %cst_53 : f32 to vector<4x128xf32>
    %156 = vector.extract_strided_slice %154 {offsets = [0, 128], sizes = [4, 128], strides = [1, 1]} : vector<4x256xf32> to vector<4x128xf32>
    %157 = tpu.concatenate %156, %155 in 1 : vector<4x128xf32>, vector<4x128xf32> -> vector<4x256xf32>
    %158 = vector.shape_cast %26 : vector<1x256xi1> to vector<1x256xi1>
    %159 = vector.broadcast %158 : vector<1x256xi1> to vector<4x256xi1>
    %160 = arith.select %159, %157, %154 : vector<4x256xi1>, vector<4x256xf32>
    %161 = vector.extract_strided_slice %160 {offsets = [0, 0], sizes = [4, 64], strides = [1, 1]} : vector<4x256xf32> to vector<4x64xf32>
    %c1_54 = arith.constant 1 : index
    %c0_55 = arith.constant 0 : index
    %c0_56 = arith.constant 0 : index
    %162 = vector.load %arg7[%c1_54, %c0_55, %c0_56] : memref<2x4x64xf32, #tpu.memory_space<vmem>>, vector<1x4x64xf32>
    %163 = vector.shape_cast %162 : vector<1x4x64xf32> to vector<4x64xf32>
    %164 = vector.shape_cast %161 : vector<4x64xf32> to vector<1x4x64xf32>
    tpu.vector_store %arg7[%c1_54, %c0_55, %c0_56], %164 {strides = array<i32>} : memref<2x4x64xf32, #tpu.memory_space<vmem>>, vector<1x4x64xf32>,
    return
  }
  func.func @transform_0(%arg0: i32, %arg1: i32) -> (i32, i32, i32) {
    %c0_i32 = arith.constant 0 : i32
    %c0_i32_0 = arith.constant 0 : i32
    return %arg0, %c0_i32, %arg1 : i32, i32, i32
  }
  func.func @transform_1(%arg0: i32, %arg1: i32) -> (i32, i32) {
    %c0_i32 = arith.constant 0 : i32
    %c0_i32_0 = arith.constant 0 : i32
    %c0_i32_1 = arith.constant 0 : i32
    return %c0_i32, %c0_i32_0 : i32, i32
  }
  func.func @transform_2(%arg0: i32, %arg1: i32) -> (i32, i32) {
    %c0_i32 = arith.constant 0 : i32
    %c0_i32_0 = arith.constant 0 : i32
    %c0_i32_1 = arith.constant 0 : i32
    return %c0_i32, %c0_i32_0 : i32, i32
  }
  func.func @transform_3(%arg0: i32, %arg1: i32) -> (i32, i32) {
    %c0_i32 = arith.constant 0 : i32
    %c0_i32_0 = arith.constant 0 : i32
    %c0_i32_1 = arith.constant 0 : i32
    return %c0_i32, %c0_i32_0 : i32, i32
  }
  func.func @transform_4(%arg0: i32, %arg1: i32) -> (i32, i32) {
    %c0_i32 = arith.constant 0 : i32
    %c0_i32_0 = arith.constant 0 : i32
    %c0_i32_1 = arith.constant 0 : i32
    return %c0_i32, %c0_i32_0 : i32, i32
  }
  func.func @transform_5(%arg0: i32, %arg1: i32) -> (i32, i32, i32) {
    %c0_i32 = arith.constant 0 : i32
    %c0_i32_0 = arith.constant 0 : i32
    return %arg0, %c0_i32, %arg1 : i32, i32, i32
  }
}

module attributes {stable_mosaic.version = 11 : i64} {
  func.func @kernel(%arg0: i32, %arg1: i32, %arg2: memref<2x4x256xf32, #tpu.memory_space<vmem>>, %arg3: memref<4x1xf32, #tpu.memory_space<vmem>>, %arg4: memref<4x1xf32, #tpu.memory_space<vmem>>, %arg5: memref<4x4xf32, #tpu.memory_space<vmem>>, %arg6: memref<8x256xf32, #tpu.memory_space<vmem>>, %arg7: memref<2x4x64xf32, #tpu.memory_space<vmem>>) attributes {dimension_semantics = [#tpu.dimension_semantics<parallel>, #tpu.dimension_semantics<parallel>], iteration_bounds = array<i64: 1, 1>, scalar_prefetch = 0 : i64, scratch_operands = 0 : i64, tpu.core_type = #tpu.core_type<tc>, window_params = [{transform_indices = @transform_0, window_bounds = array<i64: 2, 4, 256>}, {pipeline_mode = #tpu.pipeline_mode<synchronous>, transform_indices = @transform_1, window_bounds = array<i64: 4, 1>}, {pipeline_mode = #tpu.pipeline_mode<synchronous>, transform_indices = @transform_2, window_bounds = array<i64: 4, 1>}, {pipeline_mode = #tpu.pipeline_mode<synchronous>, transform_indices = @transform_3, window_bounds = array<i64: 4, 4>}, {pipeline_mode = #tpu.pipeline_mode<synchronous>, transform_indices = @transform_4, window_bounds = array<i64: 8, 256>}, {transform_indices = @transform_5, window_bounds = array<i64: 2, 4, 64>}]} {
    %c0 = arith.constant 0 : index
    %c0_0 = arith.constant 0 : index
    %0 = vector.load %arg3[%c0, %c0_0] : memref<4x1xf32, #tpu.memory_space<vmem>>, vector<4x1xf32>
    %c0_1 = arith.constant 0 : index
    %c0_2 = arith.constant 0 : index
    %1 = vector.load %arg4[%c0_1, %c0_2] : memref<4x1xf32, #tpu.memory_space<vmem>>, vector<4x1xf32>
    %c0_3 = arith.constant 0 : index
    %c0_4 = arith.constant 0 : index
    %2 = vector.load %arg5[%c0_3, %c0_4] : memref<4x4xf32, #tpu.memory_space<vmem>>, vector<4x4xf32>
    %c0_5 = arith.constant 0 : index
    %c0_6 = arith.constant 0 : index
    %3 = vector.load %arg6[%c0_5, %c0_6] : memref<8x256xf32, #tpu.memory_space<vmem>>, vector<1x256xf32>
    %cst = arith.constant 0.000000e+00 : f32
    %4 = vector.broadcast %cst : f32 to vector<1x256xf32>
    %5 = arith.cmpf one, %3, %4 : vector<1x256xf32>
    %c1 = arith.constant 1 : index
    %c0_7 = arith.constant 0 : index
    %6 = vector.load %arg6[%c1, %c0_7] : memref<8x256xf32, #tpu.memory_space<vmem>>, vector<1x256xf32>
    %cst_8 = arith.constant 0.000000e+00 : f32
    %7 = vector.broadcast %cst_8 : f32 to vector<1x256xf32>
    %8 = arith.cmpf one, %6, %7 : vector<1x256xf32>
    %c2 = arith.constant 2 : index
    %c0_9 = arith.constant 0 : index
    %9 = vector.load %arg6[%c2, %c0_9] : memref<8x256xf32, #tpu.memory_space<vmem>>, vector<1x256xf32>
    %cst_10 = arith.constant 0.000000e+00 : f32
    %10 = vector.broadcast %cst_10 : f32 to vector<1x256xf32>
    %11 = arith.cmpf one, %9, %10 : vector<1x256xf32>
    %c3 = arith.constant 3 : index
    %c0_11 = arith.constant 0 : index
    %12 = vector.load %arg6[%c3, %c0_11] : memref<8x256xf32, #tpu.memory_space<vmem>>, vector<1x256xf32>
    %cst_12 = arith.constant 0.000000e+00 : f32
    %13 = vector.broadcast %cst_12 : f32 to vector<1x256xf32>
    %14 = arith.cmpf one, %12, %13 : vector<1x256xf32>
    %c4 = arith.constant 4 : index
    %c0_13 = arith.constant 0 : index
    %15 = vector.load %arg6[%c4, %c0_13] : memref<8x256xf32, #tpu.memory_space<vmem>>, vector<1x256xf32>
    %cst_14 = arith.constant 0.000000e+00 : f32
    %16 = vector.broadcast %cst_14 : f32 to vector<1x256xf32>
    %17 = arith.cmpf one, %15, %16 : vector<1x256xf32>
    %c5 = arith.constant 5 : index
    %c0_15 = arith.constant 0 : index
    %18 = vector.load %arg6[%c5, %c0_15] : memref<8x256xf32, #tpu.memory_space<vmem>>, vector<1x256xf32>
    %cst_16 = arith.constant 0.000000e+00 : f32
    %19 = vector.broadcast %cst_16 : f32 to vector<1x256xf32>
    %20 = arith.cmpf one, %18, %19 : vector<1x256xf32>
    %c6 = arith.constant 6 : index
    %c0_17 = arith.constant 0 : index
    %21 = vector.load %arg6[%c6, %c0_17] : memref<8x256xf32, #tpu.memory_space<vmem>>, vector<1x256xf32>
    %cst_18 = arith.constant 0.000000e+00 : f32
    %22 = vector.broadcast %cst_18 : f32 to vector<1x256xf32>
    %23 = arith.cmpf one, %21, %22 : vector<1x256xf32>
    %c7 = arith.constant 7 : index
    %c0_19 = arith.constant 0 : index
    %24 = vector.load %arg6[%c7, %c0_19] : memref<8x256xf32, #tpu.memory_space<vmem>>, vector<1x256xf32>
    %cst_20 = arith.constant 0.000000e+00 : f32
    %25 = vector.broadcast %cst_20 : f32 to vector<1x256xf32>
    %26 = arith.cmpf one, %24, %25 : vector<1x256xf32>
    %c0_21 = arith.constant 0 : index
    %c0_22 = arith.constant 0 : index
    %c0_23 = arith.constant 0 : index
    %27 = vector.load %arg2[%c0_21, %c0_22, %c0_23] : memref<2x4x256xf32, #tpu.memory_space<vmem>>, vector<1x4x256xf32>
    %28 = vector.shape_cast %27 : vector<1x4x256xf32> to vector<4x256xf32>
    %29 = vector.broadcast %0 : vector<4x1xf32> to vector<4x256xf32>
    %30 = arith.mulf %28, %29 : vector<4x256xf32>
    %31 = vector.broadcast %1 : vector<4x1xf32> to vector<4x256xf32>
    %32 = arith.addf %30, %31 : vector<4x256xf32>
    %cst_24 = arith.constant 0.000000e+00 : f32
    %33 = vector.broadcast %cst_24 : f32 to vector<4x256xf32>
    %34 = arith.maximumf %32, %33 : vector<4x256xf32>
    %cst_25 = arith.constant dense<0.000000e+00> : vector<4x256xf32>
    %35 = tpu.matmul %2, %34, %cst_25 {dimension_numbers = #tpu.dot_dimension_numbers<[1], [0], [0], [1], [0, 0, 1, 1], [], []>} : vector<4x4xf32>, vector<4x256xf32>, vector<4x256xf32> -> vector<4x256xf32>
    %cst_26 = arith.constant 0.000000e+00 : f32
    %36 = vector.broadcast %cst_26 : f32 to vector<4x16xf32>
    %37 = vector.extract_strided_slice %35 {offsets = [0, 16], sizes = [4, 240], strides = [1, 1]} : vector<4x256xf32> to vector<4x240xf32>
    %38 = tpu.concatenate %37, %36 in 1 : vector<4x240xf32>, vector<4x16xf32> -> vector<4x256xf32>
    %39 = arith.maximumf %35, %38 : vector<4x256xf32>
    %cst_27 = arith.constant 0.000000e+00 : f32
    %40 = vector.broadcast %cst_27 : f32 to vector<4x1xf32>
    %41 = vector.extract_strided_slice %39 {offsets = [0, 1], sizes = [4, 255], strides = [1, 1]} : vector<4x256xf32> to vector<4x255xf32>
    %42 = tpu.concatenate %41, %40 in 1 : vector<4x255xf32>, vector<4x1xf32> -> vector<4x256xf32>
    %43 = arith.maximumf %39, %42 : vector<4x256xf32>
    %cst_28 = arith.constant 0.000000e+00 : f32
    %44 = vector.broadcast %cst_28 : f32 to vector<4x1xf32>
    %45 = vector.extract_strided_slice %43 {offsets = [0, 1], sizes = [4, 255], strides = [1, 1]} : vector<4x256xf32> to vector<4x255xf32>
    %46 = tpu.concatenate %45, %44 in 1 : vector<4x255xf32>, vector<4x1xf32> -> vector<4x256xf32>
    %47 = vector.shape_cast %5 : vector<1x256xi1> to vector<1x256xi1>
    %48 = vector.broadcast %47 : vector<1x256xi1> to vector<4x256xi1>
    %49 = arith.select %48, %46, %43 : vector<4x256xi1>, vector<4x256xf32>
    %cst_29 = arith.constant 0.000000e+00 : f32
    %50 = vector.broadcast %cst_29 : f32 to vector<4x2xf32>
    %51 = vector.extract_strided_slice %49 {offsets = [0, 2], sizes = [4, 254], strides = [1, 1]} : vector<4x256xf32> to vector<4x254xf32>
    %52 = tpu.concatenate %51, %50 in 1 : vector<4x254xf32>, vector<4x2xf32> -> vector<4x256xf32>
    %53 = vector.shape_cast %8 : vector<1x256xi1> to vector<1x256xi1>
    %54 = vector.broadcast %53 : vector<1x256xi1> to vector<4x256xi1>
    %55 = arith.select %54, %52, %49 : vector<4x256xi1>, vector<4x256xf32>
    %cst_30 = arith.constant 0.000000e+00 : f32
    %56 = vector.broadcast %cst_30 : f32 to vector<4x4xf32>
    %57 = vector.extract_strided_slice %55 {offsets = [0, 4], sizes = [4, 252], strides = [1, 1]} : vector<4x256xf32> to vector<4x252xf32>
    %58 = tpu.concatenate %57, %56 in 1 : vector<4x252xf32>, vector<4x4xf32> -> vector<4x256xf32>
    %59 = vector.shape_cast %11 : vector<1x256xi1> to vector<1x256xi1>
    %60 = vector.broadcast %59 : vector<1x256xi1> to vector<4x256xi1>
    %61 = arith.select %60, %58, %55 : vector<4x256xi1>, vector<4x256xf32>
    %cst_31 = arith.constant 0.000000e+00 : f32
    %62 = vector.broadcast %cst_31 : f32 to vector<4x8xf32>
    %63 = vector.extract_strided_slice %61 {offsets = [0, 8], sizes = [4, 248], strides = [1, 1]} : vector<4x256xf32> to vector<4x248xf32>
    %64 = tpu.concatenate %63, %62 in 1 : vector<4x248xf32>, vector<4x8xf32> -> vector<4x256xf32>
    %65 = vector.shape_cast %14 : vector<1x256xi1> to vector<1x256xi1>
    %66 = vector.broadcast %65 : vector<1x256xi1> to vector<4x256xi1>
    %67 = arith.select %66, %64, %61 : vector<4x256xi1>, vector<4x256xf32>
    %cst_32 = arith.constant 0.000000e+00 : f32
    %68 = vector.broadcast %cst_32 : f32 to vector<4x16xf32>
    %69 = vector.extract_strided_slice %67 {offsets = [0, 16], sizes = [4, 240], strides = [1, 1]} : vector<4x256xf32> to vector<4x240xf32>
    %70 = tpu.concatenate %69, %68 in 1 : vector<4x240xf32>, vector<4x16xf32> -> vector<4x256xf32>
    %71 = vector.shape_cast %17 : vector<1x256xi1> to vector<1x256xi1>
    %72 = vector.broadcast %71 : vector<1x256xi1> to vector<4x256xi1>
    %73 = arith.select %72, %70, %67 : vector<4x256xi1>, vector<4x256xf32>
    %cst_33 = arith.constant 0.000000e+00 : f32
    %74 = vector.broadcast %cst_33 : f32 to vector<4x32xf32>
    %75 = vector.extract_strided_slice %73 {offsets = [0, 32], sizes = [4, 224], strides = [1, 1]} : vector<4x256xf32> to vector<4x224xf32>
    %76 = tpu.concatenate %75, %74 in 1 : vector<4x224xf32>, vector<4x32xf32> -> vector<4x256xf32>
    %77 = vector.shape_cast %20 : vector<1x256xi1> to vector<1x256xi1>
    %78 = vector.broadcast %77 : vector<1x256xi1> to vector<4x256xi1>
    %79 = arith.select %78, %76, %73 : vector<4x256xi1>, vector<4x256xf32>
    %cst_34 = arith.constant 0.000000e+00 : f32
    %80 = vector.broadcast %cst_34 : f32 to vector<4x64xf32>
    %81 = vector.extract_strided_slice %79 {offsets = [0, 64], sizes = [4, 192], strides = [1, 1]} : vector<4x256xf32> to vector<4x192xf32>
    %82 = tpu.concatenate %81, %80 in 1 : vector<4x192xf32>, vector<4x64xf32> -> vector<4x256xf32>
    %83 = vector.shape_cast %23 : vector<1x256xi1> to vector<1x256xi1>
    %84 = vector.broadcast %83 : vector<1x256xi1> to vector<4x256xi1>
    %85 = arith.select %84, %82, %79 : vector<4x256xi1>, vector<4x256xf32>
    %cst_35 = arith.constant 0.000000e+00 : f32
    %86 = vector.broadcast %cst_35 : f32 to vector<4x128xf32>
    %87 = vector.extract_strided_slice %85 {offsets = [0, 128], sizes = [4, 128], strides = [1, 1]} : vector<4x256xf32> to vector<4x128xf32>
    %88 = tpu.concatenate %87, %86 in 1 : vector<4x128xf32>, vector<4x128xf32> -> vector<4x256xf32>
    %89 = vector.shape_cast %26 : vector<1x256xi1> to vector<1x256xi1>
    %90 = vector.broadcast %89 : vector<1x256xi1> to vector<4x256xi1>
    %91 = arith.select %90, %88, %85 : vector<4x256xi1>, vector<4x256xf32>
    %92 = vector.extract_strided_slice %91 {offsets = [0, 0], sizes = [4, 64], strides = [1, 1]} : vector<4x256xf32> to vector<4x64xf32>
    %c0_36 = arith.constant 0 : index
    %c0_37 = arith.constant 0 : index
    %c0_38 = arith.constant 0 : index
    %93 = vector.load %arg7[%c0_36, %c0_37, %c0_38] : memref<2x4x64xf32, #tpu.memory_space<vmem>>, vector<1x4x64xf32>
    %94 = vector.shape_cast %93 : vector<1x4x64xf32> to vector<4x64xf32>
    %95 = vector.shape_cast %92 : vector<4x64xf32> to vector<1x4x64xf32>
    tpu.vector_store %arg7[%c0_36, %c0_37, %c0_38], %95 {strides = array<i32>} : memref<2x4x64xf32, #tpu.memory_space<vmem>>, vector<1x4x64xf32>,
    %c1_39 = arith.constant 1 : index
    %c0_40 = arith.constant 0 : index
    %c0_41 = arith.constant 0 : index
    %96 = vector.load %arg2[%c1_39, %c0_40, %c0_41] : memref<2x4x256xf32, #tpu.memory_space<vmem>>, vector<1x4x256xf32>
    %97 = vector.shape_cast %96 : vector<1x4x256xf32> to vector<4x256xf32>
    %98 = vector.broadcast %0 : vector<4x1xf32> to vector<4x256xf32>
    %99 = arith.mulf %97, %98 : vector<4x256xf32>
    %100 = vector.broadcast %1 : vector<4x1xf32> to vector<4x256xf32>
    %101 = arith.addf %99, %100 : vector<4x256xf32>
    %cst_42 = arith.constant 0.000000e+00 : f32
    %102 = vector.broadcast %cst_42 : f32 to vector<4x256xf32>
    %103 = arith.maximumf %101, %102 : vector<4x256xf32>
    %cst_43 = arith.constant dense<0.000000e+00> : vector<4x256xf32>
    %104 = tpu.matmul %2, %103, %cst_43 {dimension_numbers = #tpu.dot_dimension_numbers<[1], [0], [0], [1], [0, 0, 1, 1], [], []>} : vector<4x4xf32>, vector<4x256xf32>, vector<4x256xf32> -> vector<4x256xf32>
    %cst_44 = arith.constant 0.000000e+00 : f32
    %105 = vector.broadcast %cst_44 : f32 to vector<4x16xf32>
    %106 = vector.extract_strided_slice %104 {offsets = [0, 16], sizes = [4, 240], strides = [1, 1]} : vector<4x256xf32> to vector<4x240xf32>
    %107 = tpu.concatenate %106, %105 in 1 : vector<4x240xf32>, vector<4x16xf32> -> vector<4x256xf32>
    %108 = arith.maximumf %104, %107 : vector<4x256xf32>
    %cst_45 = arith.constant 0.000000e+00 : f32
    %109 = vector.broadcast %cst_45 : f32 to vector<4x1xf32>
    %110 = vector.extract_strided_slice %108 {offsets = [0, 1], sizes = [4, 255], strides = [1, 1]} : vector<4x256xf32> to vector<4x255xf32>
    %111 = tpu.concatenate %110, %109 in 1 : vector<4x255xf32>, vector<4x1xf32> -> vector<4x256xf32>
    %112 = arith.maximumf %108, %111 : vector<4x256xf32>
    %cst_46 = arith.constant 0.000000e+00 : f32
    %113 = vector.broadcast %cst_46 : f32 to vector<4x1xf32>
    %114 = vector.extract_strided_slice %112 {offsets = [0, 1], sizes = [4, 255], strides = [1, 1]} : vector<4x256xf32> to vector<4x255xf32>
    %115 = tpu.concatenate %114, %113 in 1 : vector<4x255xf32>, vector<4x1xf32> -> vector<4x256xf32>
    %116 = vector.shape_cast %5 : vector<1x256xi1> to vector<1x256xi1>
    %117 = vector.broadcast %116 : vector<1x256xi1> to vector<4x256xi1>
    %118 = arith.select %117, %115, %112 : vector<4x256xi1>, vector<4x256xf32>
    %cst_47 = arith.constant 0.000000e+00 : f32
    %119 = vector.broadcast %cst_47 : f32 to vector<4x2xf32>
    %120 = vector.extract_strided_slice %118 {offsets = [0, 2], sizes = [4, 254], strides = [1, 1]} : vector<4x256xf32> to vector<4x254xf32>
    %121 = tpu.concatenate %120, %119 in 1 : vector<4x254xf32>, vector<4x2xf32> -> vector<4x256xf32>
    %122 = vector.shape_cast %8 : vector<1x256xi1> to vector<1x256xi1>
    %123 = vector.broadcast %122 : vector<1x256xi1> to vector<4x256xi1>
    %124 = arith.select %123, %121, %118 : vector<4x256xi1>, vector<4x256xf32>
    %cst_48 = arith.constant 0.000000e+00 : f32
    %125 = vector.broadcast %cst_48 : f32 to vector<4x4xf32>
    %126 = vector.extract_strided_slice %124 {offsets = [0, 4], sizes = [4, 252], strides = [1, 1]} : vector<4x256xf32> to vector<4x252xf32>
    %127 = tpu.concatenate %126, %125 in 1 : vector<4x252xf32>, vector<4x4xf32> -> vector<4x256xf32>
    %128 = vector.shape_cast %11 : vector<1x256xi1> to vector<1x256xi1>
    %129 = vector.broadcast %128 : vector<1x256xi1> to vector<4x256xi1>
    %130 = arith.select %129, %127, %124 : vector<4x256xi1>, vector<4x256xf32>
    %cst_49 = arith.constant 0.000000e+00 : f32
    %131 = vector.broadcast %cst_49 : f32 to vector<4x8xf32>
    %132 = vector.extract_strided_slice %130 {offsets = [0, 8], sizes = [4, 248], strides = [1, 1]} : vector<4x256xf32> to vector<4x248xf32>
    %133 = tpu.concatenate %132, %131 in 1 : vector<4x248xf32>, vector<4x8xf32> -> vector<4x256xf32>
    %134 = vector.shape_cast %14 : vector<1x256xi1> to vector<1x256xi1>
    %135 = vector.broadcast %134 : vector<1x256xi1> to vector<4x256xi1>
    %136 = arith.select %135, %133, %130 : vector<4x256xi1>, vector<4x256xf32>
    %cst_50 = arith.constant 0.000000e+00 : f32
    %137 = vector.broadcast %cst_50 : f32 to vector<4x16xf32>
    %138 = vector.extract_strided_slice %136 {offsets = [0, 16], sizes = [4, 240], strides = [1, 1]} : vector<4x256xf32> to vector<4x240xf32>
    %139 = tpu.concatenate %138, %137 in 1 : vector<4x240xf32>, vector<4x16xf32> -> vector<4x256xf32>
    %140 = vector.shape_cast %17 : vector<1x256xi1> to vector<1x256xi1>
    %141 = vector.broadcast %140 : vector<1x256xi1> to vector<4x256xi1>
    %142 = arith.select %141, %139, %136 : vector<4x256xi1>, vector<4x256xf32>
    %cst_51 = arith.constant 0.000000e+00 : f32
    %143 = vector.broadcast %cst_51 : f32 to vector<4x32xf32>
    %144 = vector.extract_strided_slice %142 {offsets = [0, 32], sizes = [4, 224], strides = [1, 1]} : vector<4x256xf32> to vector<4x224xf32>
    %145 = tpu.concatenate %144, %143 in 1 : vector<4x224xf32>, vector<4x32xf32> -> vector<4x256xf32>
    %146 = vector.shape_cast %20 : vector<1x256xi1> to vector<1x256xi1>
    %147 = vector.broadcast %146 : vector<1x256xi1> to vector<4x256xi1>
    %148 = arith.select %147, %145, %142 : vector<4x256xi1>, vector<4x256xf32>
    %cst_52 = arith.constant 0.000000e+00 : f32
    %149 = vector.broadcast %cst_52 : f32 to vector<4x64xf32>
    %150 = vector.extract_strided_slice %148 {offsets = [0, 64], sizes = [4, 192], strides = [1, 1]} : vector<4x256xf32> to vector<4x192xf32>
    %151 = tpu.concatenate %150, %149 in 1 : vector<4x192xf32>, vector<4x64xf32> -> vector<4x256xf32>
    %152 = vector.shape_cast %23 : vector<1x256xi1> to vector<1x256xi1>
    %153 = vector.broadcast %152 : vector<1x256xi1> to vector<4x256xi1>
    %154 = arith.select %153, %151, %148 : vector<4x256xi1>, vector<4x256xf32>
    %cst_53 = arith.constant 0.000000e+00 : f32
    %155 = vector.broadcast %cst_53 : f32 to vector<4x128xf32>
    %156 = vector.extract_strided_slice %154 {offsets = [0, 128], sizes = [4, 128], strides = [1, 1]} : vector<4x256xf32> to vector<4x128xf32>
    %157 = tpu.concatenate %156, %155 in 1 : vector<4x128xf32>, vector<4x128xf32> -> vector<4x256xf32>
    %158 = vector.shape_cast %26 : vector<1x256xi1> to vector<1x256xi1>
    %159 = vector.broadcast %158 : vector<1x256xi1> to vector<4x256xi1>
    %160 = arith.select %159, %157, %154 : vector<4x256xi1>, vector<4x256xf32>
    %161 = vector.extract_strided_slice %160 {offsets = [0, 0], sizes = [4, 64], strides = [1, 1]} : vector<4x256xf32> to vector<4x64xf32>
    %c1_54 = arith.constant 1 : index
    %c0_55 = arith.constant 0 : index
    %c0_56 = arith.constant 0 : index
    %162 = vector.load %arg7[%c1_54, %c0_55, %c0_56] : memref<2x4x64xf32, #tpu.memory_space<vmem>>, vector<1x4x64xf32>
    %163 = vector.shape_cast %162 : vector<1x4x64xf32> to vector<4x64xf32>
    %164 = vector.shape_cast %161 : vector<4x64xf32> to vector<1x4x64xf32>
    tpu.vector_store %arg7[%c1_54, %c0_55, %c0_56], %164 {strides = array<i32>} : memref<2x4x64xf32, #tpu.memory_space<vmem>>, vector<1x4x64xf32>,
    return
  }
  func.func @transform_0(%arg0: i32, %arg1: i32) -> (i32, i32, i32) {
    %c0_i32 = arith.constant 0 : i32
    %c0_i32_0 = arith.constant 0 : i32
    return %arg0, %c0_i32, %arg1 : i32, i32, i32
  }
  func.func @transform_1(%arg0: i32, %arg1: i32) -> (i32, i32) {
    %c0_i32 = arith.constant 0 : i32
    %c0_i32_0 = arith.constant 0 : i32
    %c0_i32_1 = arith.constant 0 : i32
    return %c0_i32, %c0_i32_0 : i32, i32
  }
  func.func @transform_2(%arg0: i32, %arg1: i32) -> (i32, i32) {
    %c0_i32 = arith.constant 0 : i32
    %c0_i32_0 = arith.constant 0 : i32
    %c0_i32_1 = arith.constant 0 : i32
    return %c0_i32, %c0_i32_0 : i32, i32
  }
  func.func @transform_3(%arg0: i32, %arg1: i32) -> (i32, i32) {
    %c0_i32 = arith.constant 0 : i32
    %c0_i32_0 = arith.constant 0 : i32
    %c0_i32_1 = arith.constant 0 : i32
    return %c0_i32, %c0_i32_0 : i32, i32
  }
  func.func @transform_4(%arg0: i32, %arg1: i32) -> (i32, i32) {
    %c0_i32 = arith.constant 0 : i32
    %c0_i32_0 = arith.constant 0 : i32
    %c0_i32_1 = arith.constant 0 : i32
    return %c0_i32, %c0_i32_0 : i32, i32
  }
  func.func @transform_5(%arg0: i32, %arg1: i32) -> (i32, i32, i32) {
    %c0_i32 = arith.constant 0 : i32
    %c0_i32_0 = arith.constant 0 : i32
    return %arg0, %c0_i32, %arg1 : i32, i32, i32
  }
}

</mosaic_0001>

<bundles_post_ra>
// kernel: tpu_custom_call.1
= control target key start
LH: loop header
LB: loop body
LE: loop exit
PB: predicated region body
PF: predicated region fallthrough
CT: control target
= control target key end

     0   :  { %10 = vsyncpa [#allocation3], 0  ;;  %s852_s0 = inlined_call_operand.hbm [shape: f32[2,4,256], index: 0, kind: input, shape index: {}]   ;;  %s853_s1 = inlined_call_operand.vmem [shape: f32[4,1], index: 1, kind: input, shape index: {}]   ;;  %s854_s2 = inlined_call_operand.vmem [shape: f32[4,1], index: 2, kind: input, shape index: {}]   ;;  %s855_s3 = inlined_call_operand.vmem [shape: f32[4,4], index: 3, kind: input, shape index: {}]   ;;  %s856_s4 = inlined_call_operand.vmem [shape: f32[8,256], index: 4, kind: input, shape index: {}]   ;;  %s857_s5 = inlined_call_operand.hbm [shape: f32[2,4,64], index: 5, kind: output, shape index: {}]  }
   0x1   :  { %11 = vsyncpa [#allocation4], 0  ;;  %s659_s18 = smov [#allocation2]   ;;  %s611_s22 = scalar_lea.hbm %s852_s0, 256 }
   0x2   :  { %s17_s19 = sshll.u32 %s659_s18, 4  ;;  %p612_p0 = scmp.ne.s32.totalorder %s852_s0, %s611_s22  ;;  %s18_s19 = int_to_ptr.vmem [resolvable:$true] %s17_s19 }
   0x3   :  { %p615_p1 = scmp.lt.u32.totalorder %s611_s22, %s852_s0 }
   0x5   :  { %p617_p2 = pnand %p615_p1, %p612_p0 }
   0x7   :  { %620 = shalt.err (!%p617_p2)
}
   0x8   :  { %s621_s27 = scalar_lea.vmem %s18_s19, 256  ;;  %p626_p4 = scmp.lt.s32.totalorder %s18_s19, %s18_s19 }
   0x9   :  { %p622_p3 = scmp.ne.s32.totalorder %s18_s19, %s621_s27  ;;  %p627_p5 = scmp.lt.s32.totalorder %s621_s27, %s621_s27 }
   0xb   :  { %p628_p6 = por %p627_p5, %p626_p4 }
   0xd   :  { %p629_p7 = pnand %p628_p6, %p622_p3 }
   0xf   :  { %632 = shalt.err (!%p629_p7)
}
  0x10   :  { %s660_s28 = smov 128   ;;  %s661_s29 = smov 8  }
  0x11   :  { %23 = dma.hbm_to_vmem [thread:$0]  %s852_s0, 256, %s18_s19, [#allocation3], %s660_s28, %s660_s28, %s661_s29  }
  0x12   :  { %655 = dma.done.wait [#allocation3], 256  }
  0x13   :  { %656 = vsyncadd [#allocation3], 4294967040  ;;  %v662_v0 = vmov 0   ;;  %v35_v1 = vld [vmem:[%s853_s1] sm:$0xf]  ;;  %v663_v3 = vmov 0.0   ;;  %v69_v6 = vlaneseq }
  0x14   :  { %610 = vset.pattern.permute.xlu0 %v662_v0  ;;  %v36_v2 = vld [vmem:[%s854_s2] sm:$0xf]  ;;  %164 = vmatprep.mubr.f32.mxu0 %v663_v3  ;;  %v664_v4 = vmov 839922192   ;;  %v373_v13 = vld [vmem:[#allocation2 + $0x8] sm:$0xff]  ;;  %vm95_vm0 = vcmask 1043456  }
  0x15   :  { %64 = vperm.xlu0 %610, %v35_v1   ;;  %447 = vmatprep.mubr.f32.mxu1 %v663_v3  ;;  %v67_v5 = vunpack.c.l.s4 %v664_v4  ;;  %v723_v8 = vshrl.u32 %v69_v6, 7  ;;  %v61_v12 = vld [vmem:[#allocation2] sm:$0xff]  ;;  %vm91_vm1 = vcmask 31744   ;;  %s665_s2 = smov 112   ;;  %vm177_vm2 = vcmask 916480   ;;  %s667_s13 = smov 126  }
  0x16   :  { %v37_v24 = vld [vmem:[%s855_s3] sm:$0xf]  ;;  %s666_s3 = smov 127   ;;  %vm190_vm3 = vcmask 1039360   ;;  %vm226_vm8 = vcmask 1031168   ;;  %s668_s16 = smov 124  }
  0x17   :  { %v68_v7 = vunpack.c.0.s8 %v67_v5  ;;  %v38_v53 = vld [vmem:[%s856_s4] ss:$8 sm:$0x3]  ;;  %v745_v54 = vsub.s32 0, %v723_v8  ;;  %v748_v55 = vsub.s32 1, %v723_v8  ;;  %vm250_vm12 = vcmask 1014784  }
  0x18   :  { %vm39_vm4 = vcmp.ne.f32.partialorder %v38_v53, 0.0  ;;  %s669_s19 = smov 120   ;;  %s670_s24 = smov 96  }
  0x19   :  { %77 = vperm.xlu0 %610, %v36_v2   ;;  %v71_v9 = vsub.s32 %v68_v7, %v723_v8  ;;  %v207_v56 = vsel %vm39_vm4, 1, %v662_v0  ;;  %v582_v8 = vld [vmem:[%s856_s4 + $0x1] ss:$8 sm:$0x3]  ;;  %s671_s27 = smov 64  }
  0x1a   :  { %v215_v57 = vrot.slane %v207_v56, %v748_v55  ;;  %v211_v58 = vrot.slane %v207_v56, %v745_v54  ;;  %vm42_vm7 = vcmp.ne.f32.partialorder %v582_v8, 0.0 }
  0x1c   :  { %vm217_vm5 = vcmp.eq.s32.totalorder %v215_v57, 1  ;;  %vm216_vm6 = vcmp.eq.s32.totalorder %v211_v58, 1  ;;  %v585_v58 = vld [vmem:[%s856_s4 + $0x4] ss:$8 sm:$0x3] }
  0x1d   :  { %vm51_vm4 = vcmp.ne.f32.partialorder %v585_v58, 0.0 }
  0x94   :  { %v65_v10 = vpop.permute.xlu0 %64 }
  0x95   :  { %v72_v11 = vrot.slane %v65_v10, %v71_v9 }
  0x97   :  { %v74_v15 = vmul.f32 %v72_v11, %v61_v12  ;;  %v374_v16 = vmul.f32 %v373_v13, %v72_v11 }
  0x98   :  { %v78_v14 = vpop.permute.xlu0 %77 }
  0x99   :  { %v85_v17 = vrot.slane %v78_v14, %v71_v9  ;;  %v231_v9 = vsel %vm42_vm7, 1, %v662_v0 }
  0x9a   :  { %v239_v10 = vrot.slane %v231_v9, %v748_v55  ;;  %v235_v11 = vrot.slane %v231_v9, %v745_v54 }
  0x9b   :  { %v87_v18 = vadd.f32 %v85_v17, %v74_v15  ;;  %v375_v19 = vadd.f32 %v374_v16, %v85_v17 }
  0x9c   :  { %vm241_vm9 = vcmp.eq.s32.totalorder %v239_v10, 1  ;;  %vm240_vm10 = vcmp.eq.s32.totalorder %v235_v11, 1  ;;  %v586_v11 = vld [vmem:[%s856_s4 + $0x5] ss:$8 sm:$0x3] }
  0x9d   :  { %v88_v20 = vmax.f32 %v87_v18, 0.0  ;;  %v376_v21 = vmax.f32 %v375_v19, 0.0  ;;  %vm54_vm7 = vcmp.ne.f32.partialorder %v586_v11, 0.0 }
  0x9f   :  { %v90_v22 = vcombine.high %v88_v20, %v88_v20  ;;  %v378_v23 = vcombine.high %v376_v21, %v376_v21 }
  0xa1   :  { %589 = vmatprep.subr.msk.mxu0 %vm95_vm0, %v90_v22  ;;  %592 = vmatprep.subr.msk.mxu1 %vm95_vm0, %v378_v23 }
  0xa2   :  { %590 = vmatpush1.msk.msra.mxu0 %vm95_vm0, %v88_v20  ;;  %593 = vmatpush1.msk.msra.mxu1 %vm95_vm0, %v376_v21  ;;  %vm274_vm0 = vcmask 982016  }
  0xa3   :  { %591 = vmatmul.mubr.msk.f32.vlgmr.msra.gmra.mrb[0].mxu0 %vm91_vm1, %v37_v24  ;;  %594 = vmatmul.mubr.msk.f32.vlgmr.msra.gmra.mrb[0].mxu1 %vm91_vm1, %v37_v24  ;;  %v583_v24 = vld [vmem:[%s856_s4 + $0x2] ss:$8 sm:$0x3] }
  0xa4   :  { %vm45_vm11 = vcmp.ne.f32.partialorder %v583_v24, 0.0 }
 0x176   :  { %v166_v25 = vpop.f32.mrb[0].mxu0  ;;  %v449_v26 = vpop.f32.mrb[0].mxu1 }
 0x177   :  { %173 = vrot.lane.b32.xlu1 %v166_v25, %s665_s2  ;;  %v168_v27 = vpop.f32.mrb[1].mxu0  ;;  %v451_v28 = vpop.f32.mrb[1].mxu1  ;;  %456 = vrot.lane.b32.xlu0 %v449_v26, %s665_s2 }
 0x17b   :  { %175 = vrot.lane.b32.xlu1 %v168_v27, %s665_s2 }
 0x17f   :  { %458 = vrot.lane.b32.xlu1 %v451_v28, %s665_s2 }
 0x1e9   :  { %v174_v29 = vpop.permute.xlu1 %173  ;;  %v457_v35 = vpop.permute.xlu0 %456 }
 0x1ed   :  { %v176_v30 = vpop.permute.xlu1 %175 }
 0x1ee   :  { %v178_v31 = vsel %vm177_vm2, %v174_v29, %v176_v30  ;;  %v181_v32 = vsel %vm177_vm2, %v176_v30, 0.0 }
 0x1ef   :  { %v182_v33 = vmax.f32 %v166_v25, %v178_v31  ;;  %v183_v34 = vmax.f32 %v168_v27, %v181_v32  ;;  %v255_v25 = vsel %vm45_vm11, 1, %v662_v0 }
 0x1f0   :  { %v259_v27 = vrot.slane %v255_v25, %v745_v54 }
 0x1f1   :  { %188 = vrot.lane.b32.xlu1 %v183_v34, %s666_s3  ;;  %186 = vrot.lane.b32.xlu0 %v182_v33, %s666_s3  ;;  %v459_v36 = vpop.permute.xlu1 %458 }
 0x1f2   :  { %v460_v37 = vsel %vm177_vm2, %v457_v35, %v459_v36  ;;  %v463_v38 = vsel %vm177_vm2, %v459_v36, 0.0  ;;  %vm264_vm14 = vcmp.eq.s32.totalorder %v259_v27, 1  ;;  %v587_v27 = vld [vmem:[%s856_s4 + $0x6] ss:$8 sm:$0x3] }
 0x1f3   :  { %v464_v39 = vmax.f32 %v449_v26, %v460_v37  ;;  %v465_v40 = vmax.f32 %v451_v28, %v463_v38  ;;  %v263_v26 = vrot.slane %v255_v25, %v748_v55 }
 0x1f5   :  { %470 = vrot.lane.b32.xlu1 %v465_v40, %s666_s3  ;;  %468 = vrot.lane.b32.xlu0 %v464_v39, %s666_s3  ;;  %vm265_vm13 = vcmp.eq.s32.totalorder %v263_v26, 1 }
 0x263   :  { %v187_v41 = vpop.permute.xlu0 %186  ;;  %v189_v42 = vpop.permute.xlu1 %188 }
 0x264   :  { %v191_v43 = vsel %vm190_vm3, %v187_v41, %v189_v42  ;;  %v194_v44 = vsel %vm190_vm3, %v189_v42, 0.0 }
 0x265   :  { %v195_v45 = vmax.f32 %v182_v33, %v191_v43  ;;  %v196_v46 = vmax.f32 %v183_v34, %v194_v44 }
 0x267   :  { %v469_v47 = vpop.permute.xlu0 %468  ;;  %201 = vrot.lane.b32.xlu1 %v196_v46, %s666_s3  ;;  %199 = vrot.lane.b32.xlu0 %v195_v45, %s666_s3  ;;  %v471_v48 = vpop.permute.xlu1 %470 }
 0x268   :  { %v472_v49 = vsel %vm190_vm3, %v469_v47, %v471_v48  ;;  %v475_v50 = vsel %vm190_vm3, %v471_v48, 0.0 }
 0x269   :  { %v476_v51 = vmax.f32 %v464_v39, %v472_v49  ;;  %v477_v52 = vmax.f32 %v465_v40, %v475_v50  ;;  %v584_v40 = vld [vmem:[%s856_s4 + $0x3] ss:$8 sm:$0x3] }
 0x26a   :  { %vm48_vm15 = vcmp.ne.f32.partialorder %v584_v40, 0.0 }
 0x26b   :  { %482 = vrot.lane.b32.xlu1 %v477_v52, %s666_s3  ;;  %480 = vrot.lane.b32.xlu0 %v476_v51, %s666_s3  ;;  %v279_v41 = vsel %vm48_vm15, 1, %v662_v0 }
 0x26c   :  { %v287_v42 = vrot.slane %v279_v41, %v748_v55  ;;  %v283_v43 = vrot.slane %v279_v41, %v745_v54 }
 0x26e   :  { %vm289_vm1 = vcmp.eq.s32.totalorder %v287_v42, 1 }
 0x2d9   :  { %v200_v59 = vpop.permute.xlu0 %199  ;;  %v202_v60 = vpop.permute.xlu1 %201 }
 0x2da   :  { %v203_v61 = vsel %vm190_vm3, %v200_v59, %v202_v60  ;;  %v206_v62 = vsel %vm190_vm3, %v202_v60, 0.0  ;;  %v302_v59 = vsel %vm51_vm4, 1, %v662_v0 }
 0x2db   :  { %v219_v63 = vsel %vm217_vm5, %v206_v62, %v196_v46  ;;  %v218_v1 = vsel %vm216_vm6, %v203_v61, %v195_v45  ;;  %v310_v60 = vrot.slane %v302_v59, %v748_v55  ;;  %v306_v61 = vrot.slane %v302_v59, %v745_v54 }
 0x2dc   :  { %224 = vrot.lane.b32.xlu1 %v219_v63, %s667_s13  ;;  %222 = vrot.lane.b32.xlu0 %v218_v1, %s667_s13 }
 0x2dd   :  { %v481_v2 = vpop.permute.xlu0 %480  ;;  %v483_v3 = vpop.permute.xlu1 %482 }
 0x2de   :  { %v484_v4 = vsel %vm190_vm3, %v481_v2, %v483_v3  ;;  %v487_v5 = vsel %vm190_vm3, %v483_v3, 0.0  ;;  %vm288_vm3 = vcmp.eq.s32.totalorder %v283_v43, 1 }
 0x2df   :  { %v489_v6 = vsel %vm217_vm5, %v487_v5, %v477_v52  ;;  %v488_v7 = vsel %vm216_vm6, %v484_v4, %v476_v51  ;;  %vm312_vm5 = vcmp.eq.s32.totalorder %v310_v60, 1  ;;  %vm311_vm6 = vcmp.eq.s32.totalorder %v306_v61, 1 }
 0x2e0   :  { %494 = vrot.lane.b32.xlu1 %v489_v6, %s667_s13  ;;  %492 = vrot.lane.b32.xlu0 %v488_v7, %s667_s13 }
 0x34e   :  { %v223_v12 = vpop.permute.xlu0 %222  ;;  %v225_v13 = vpop.permute.xlu1 %224 }
 0x34f   :  { %v227_v14 = vsel %vm226_vm8, %v223_v12, %v225_v13  ;;  %v230_v15 = vsel %vm226_vm8, %v225_v13, 0.0  ;;  %v326_v12 = vsel %vm54_vm7, 1, %v662_v0 }
 0x350   :  { %v243_v16 = vsel %vm241_vm9, %v230_v15, %v219_v63  ;;  %v242_v17 = vsel %vm240_vm10, %v227_v14, %v218_v1  ;;  %v334_v13 = vrot.slane %v326_v12, %v748_v55  ;;  %v330_v14 = vrot.slane %v326_v12, %v745_v54 }
 0x351   :  { %248 = vrot.lane.b32.xlu1 %v243_v16, %s668_s16  ;;  %246 = vrot.lane.b32.xlu0 %v242_v17, %s668_s16 }
 0x352   :  { %v493_v18 = vpop.permute.xlu0 %492  ;;  %v495_v19 = vpop.permute.xlu1 %494 }
 0x353   :  { %v496_v20 = vsel %vm226_vm8, %v493_v18, %v495_v19  ;;  %v499_v21 = vsel %vm226_vm8, %v495_v19, 0.0  ;;  %vm321_vm8 = vcmask 785408  }
 0x354   :  { %v501_v22 = vsel %vm241_vm9, %v499_v21, %v489_v6  ;;  %v500_v23 = vsel %vm240_vm10, %v496_v20, %v488_v7  ;;  %vm336_vm9 = vcmp.eq.s32.totalorder %v334_v13, 1  ;;  %vm335_vm10 = vcmp.eq.s32.totalorder %v330_v14, 1 }
 0x355   :  { %506 = vrot.lane.b32.xlu1 %v501_v22, %s668_s16  ;;  %504 = vrot.lane.b32.xlu0 %v500_v23, %s668_s16 }
 0x3c3   :  { %v247_v28 = vpop.permute.xlu0 %246  ;;  %v249_v29 = vpop.permute.xlu1 %248 }
 0x3c4   :  { %v251_v30 = vsel %vm250_vm12, %v247_v28, %v249_v29  ;;  %v254_v31 = vsel %vm250_vm12, %v249_v29, 0.0  ;;  %v588_v28 = vld [vmem:[%s856_s4 + $0x7] ss:$8 sm:$0x3]  ;;  %s672_s4 = smov [#allocation5]  }
 0x3c5   :  { %v267_v32 = vsel %vm265_vm13, %v254_v31, %v243_v16  ;;  %v266_v33 = vsel %vm264_vm14, %v251_v30, %v242_v17  ;;  %vm60_vm11 = vcmp.ne.f32.partialorder %v588_v28, 0.0  ;;  %s570_s7 = sshll.u32 %s672_s4, 4  ;;  %s571_s7 = int_to_ptr.vmem [resolvable:$true] %s570_s7 }
 0x3c6   :  { %272 = vrot.lane.b32.xlu1 %v267_v32, %s669_s19  ;;  %270 = vrot.lane.b32.xlu0 %v266_v33, %s669_s19  ;;  %v363_v30 = vsel %vm60_vm11, 1, %v662_v0  ;;  %s633_s8 = scalar_lea.vmem %s571_s7, 128  ;;  %p638_p9 = scmp.lt.s32.totalorder %s571_s7, %s571_s7 }
 0x3c7   :  { %v505_v34 = vpop.permute.xlu0 %504  ;;  %v507_v35 = vpop.permute.xlu1 %506  ;;  %p634_p8 = scmp.ne.s32.totalorder %s571_s7, %s633_s8  ;;  %p639_p10 = scmp.lt.s32.totalorder %s633_s8, %s633_s8 }
 0x3c8   :  { %v508_v36 = vsel %vm250_vm12, %v505_v34, %v507_v35  ;;  %v511_v37 = vsel %vm250_vm12, %v507_v35, 0.0  ;;  %vm345_vm12 = vcmask 523264  }
 0x3c9   :  { %v513_v38 = vsel %vm265_vm13, %v511_v37, %v501_v22  ;;  %v512_v39 = vsel %vm264_vm14, %v508_v36, %v500_v23  ;;  %p640_p11 = por %p639_p10, %p638_p9 }
 0x3ca   :  { %518 = vrot.lane.b32.xlu1 %v513_v38, %s669_s19  ;;  %516 = vrot.lane.b32.xlu0 %v512_v39, %s669_s19 }
 0x3cb   :  { %p641_p12 = pnand %p640_p11, %p634_p8 }
 0x438   :  { %v271_v44 = vpop.permute.xlu0 %270  ;;  %v273_v45 = vpop.permute.xlu1 %272 }
 0x439   :  { %v275_v46 = vsel %vm274_vm0, %v271_v44, %v273_v45  ;;  %v278_v47 = vsel %vm274_vm0, %v273_v45, 0.0 }
 0x43a   :  { %v291_v48 = vsel %vm289_vm1, %v278_v47, %v267_v32  ;;  %v290_v49 = vsel %vm288_vm3, %v275_v46, %v266_v33  ;;  %v367_v33 = vrot.slane %v363_v30, %v745_v54 }
 0x43b   :  { %296 = vrot.lane.b32.xlu1 %v291_v48, %s665_s2  ;;  %294 = vrot.lane.b32.xlu0 %v290_v49, %s665_s2 }
 0x43c   :  { %v517_v50 = vpop.permute.xlu0 %516  ;;  %v519_v51 = vpop.permute.xlu1 %518  ;;  %vm818_vm15 = vcmp.eq.s32.totalorder %v367_v33, 1 }
 0x43d   :  { %v520_v52 = vsel %vm274_vm0, %v517_v50, %v519_v51  ;;  %v523_v53 = vsel %vm274_vm0, %v519_v51, 0.0  ;;  %vm370_vm0 = vcmask 519168  }
 0x43e   :  { %v525_v56 = vsel %vm289_vm1, %v523_v53, %v513_v38  ;;  %v524_v57 = vsel %vm288_vm3, %v520_v52, %v512_v39 }
 0x43f   :  { %530 = vrot.lane.b32.xlu1 %v525_v56, %s665_s2  ;;  %528 = vrot.lane.b32.xlu0 %v524_v57, %s665_s2 }
 0x4ad   :  { %v295_v62 = vpop.permute.xlu0 %294  ;;  %v297_v63 = vpop.permute.xlu1 %296 }
 0x4ae   :  { %v298_v1 = vsel %vm177_vm2, %v295_v62, %v297_v63  ;;  %v301_v2 = vsel %vm177_vm2, %v297_v63, 0.0 }
 0x4af   :  { %v314_v3 = vsel %vm312_vm5, %v301_v2, %v291_v48  ;;  %v313_v4 = vsel %vm311_vm6, %v298_v1, %v290_v49 }
 0x4b0   :  { %319 = vrot.lane.b32.xlu1 %v314_v3, %s670_s24  ;;  %317 = vrot.lane.b32.xlu0 %v313_v4, %s670_s24 }
 0x4b1   :  { %v529_v5 = vpop.permute.xlu0 %528  ;;  %v531_v6 = vpop.permute.xlu1 %530 }
 0x4b2   :  { %v532_v7 = vsel %vm177_vm2, %v529_v5, %v531_v6  ;;  %v535_v8 = vsel %vm177_vm2, %v531_v6, 0.0  ;;  %vm57_vm2 = vcmp.ne.f32.partialorder %v587_v27, 0.0 }
 0x4b3   :  { %v537_v9 = vsel %vm312_vm5, %v535_v8, %v525_v56  ;;  %v536_v10 = vsel %vm311_vm6, %v532_v7, %v524_v57  ;;  %v350_v29 = vsel %vm57_vm2, 1, %v662_v0 }
 0x4b4   :  { %542 = vrot.lane.b32.xlu1 %v537_v9, %s670_s24  ;;  %540 = vrot.lane.b32.xlu0 %v536_v10, %s670_s24  ;;  %v354_v31 = vrot.slane %v350_v29, %v745_v54  ;;  %v358_v32 = vrot.slane %v350_v29, %v748_v55 }
 0x4b6   :  { %vm810_vm13 = vcmp.eq.s32.totalorder %v354_v31, 1  ;;  %vm814_vm14 = vcmp.eq.s32.totalorder %v358_v32, 1 }
 0x522   :  { %v318_v15 = vpop.permute.xlu0 %317  ;;  %v320_v16 = vpop.permute.xlu1 %319 }
 0x523   :  { %v322_v17 = vsel %vm321_vm8, %v318_v15, %v320_v16  ;;  %v325_v18 = vsel %vm321_vm8, %v320_v16, 0.0 }
 0x524   :  { %v338_v19 = vsel %vm336_vm9, %v325_v18, %v314_v3  ;;  %v337_v20 = vsel %vm335_vm10, %v322_v17, %v313_v4 }
 0x525   :  { %343 = vrot.lane.b32.xlu1 %v338_v19, %s671_s27  ;;  %341 = vrot.lane.b32.xlu0 %v337_v20, %s671_s27 }
 0x526   :  { %v541_v21 = vpop.permute.xlu0 %540  ;;  %v543_v22 = vpop.permute.xlu1 %542 }
 0x527   :  { %v544_v23 = vsel %vm321_vm8, %v541_v21, %v543_v22  ;;  %v547_v24 = vsel %vm321_vm8, %v543_v22, 0.0 }
 0x528   :  { %v549_v25 = vsel %vm336_vm9, %v547_v24, %v537_v9  ;;  %v548_v26 = vsel %vm335_vm10, %v544_v23, %v536_v10 }
 0x529   :  { %554 = vrot.lane.b32.xlu1 %v549_v25, %s671_s27  ;;  %552 = vrot.lane.b32.xlu0 %v548_v26, %s671_s27 }
 0x597   :  { %v342_v36 = vpop.permute.xlu0 %341  ;;  %v344_v0 = vpop.permute.xlu1 %343 }
 0x598   :  { %v346_v38 = vsel %vm345_vm12, %v342_v36, %v344_v0  ;;  %v349_v55 = vsel %vm345_vm12, %v344_v0, 0.0 }
 0x599   :  { %v361_v54 = vsel %vm810_vm13, %v346_v38, %v337_v20  ;;  %v362_v39 = vsel %vm814_vm14, %v349_v55, %v338_v19 }
 0x59a   :  { %v369_v40 = vsel %vm818_vm15, %v362_v39, %v361_v54 }
 0x59b   :  { %v553_v41 = vpop.permute.xlu0 %552  ;;  %v555_v42 = vpop.permute.xlu1 %554  ;;  %371 = vst.msk [vmem:[#allocation5] sm:$0xf] %vm370_vm0, %v369_v40 }
 0x59c   :  { %v556_v43 = vsel %vm345_vm12, %v553_v41, %v555_v42  ;;  %v559_v44 = vsel %vm345_vm12, %v555_v42, 0.0 }
 0x59d   :  { %v560_v45 = vsel %vm810_vm13, %v556_v43, %v548_v26  ;;  %v561_v46 = vsel %vm814_vm14, %v559_v44, %v549_v25 }
 0x59e   :  { %v562_v47 = vsel %vm818_vm15, %v561_v46, %v560_v45 }
 0x59f   :  { %564 = vst.msk [vmem:[#allocation5 + $0x4] sm:$0xf] %vm370_vm0, %v562_v47 }
 0x5a0   :  { %644 = shalt.err (!%p641_p12)
}
 0x5a1   :  { %s645_s0 = scalar_lea.hbm %s857_s5, 128 }
 0x5a2   :  { %p646_p13 = scmp.ne.s32.totalorder %s857_s5, %s645_s0  ;;  %p649_p0 = scmp.lt.u32.totalorder %s645_s0, %s857_s5 }
 0x5a4   :  { %p651_p1 = pnand %p649_p0, %p646_p13 }
 0x5a6   :  { %654 = shalt.err (!%p651_p1)
}
 0x5a7   :  { %s673_s12 = smov 4  }
 0x5a8   :  { %576 = dma.vmem_to_hbm [thread:$0]  %s571_s7, 128, %s857_s5, [#allocation4], %s671_s27, %s671_s27, %s673_s12  }
 0x5a9   :  { %657 = dma.done.wait [#allocation4], 128  }
 0x5aa   :  { %658 = vsyncadd [#allocation4], 4294967168 }
 0x5ab   :  { %580 = vsyncpa [#allocation3], 1 }
 0x5ac   :  { %581 = vsyncpa [#allocation4], 1 }

// kernel: tpu_custom_call.1
= control target key start
LH: loop header
LB: loop body
LE: loop exit
PB: predicated region body
PF: predicated region fallthrough
CT: control target
= control target key end

     0   :  { %10 = vsyncpa [#allocation3], 0  ;;  %s852_s0 = inlined_call_operand.hbm [shape: f32[2,4,256], index: 0, kind: input, shape index: {}]   ;;  %s853_s1 = inlined_call_operand.vmem [shape: f32[4,1], index: 1, kind: input, shape index: {}]   ;;  %s854_s2 = inlined_call_operand.vmem [shape: f32[4,1], index: 2, kind: input, shape index: {}]   ;;  %s855_s3 = inlined_call_operand.vmem [shape: f32[4,4], index: 3, kind: input, shape index: {}]   ;;  %s856_s4 = inlined_call_operand.vmem [shape: f32[8,256], index: 4, kind: input, shape index: {}]   ;;  %s857_s5 = inlined_call_operand.hbm [shape: f32[2,4,64], index: 5, kind: output, shape index: {}]  }
   0x1   :  { %11 = vsyncpa [#allocation4], 0  ;;  %s659_s18 = smov [#allocation2]   ;;  %s611_s22 = scalar_lea.hbm %s852_s0, 256 }
   0x2   :  { %s17_s19 = sshll.u32 %s659_s18, 4  ;;  %p612_p0 = scmp.ne.s32.totalorder %s852_s0, %s611_s22  ;;  %s18_s19 = int_to_ptr.vmem [resolvable:$true] %s17_s19 }
   0x3   :  { %p615_p1 = scmp.lt.u32.totalorder %s611_s22, %s852_s0 }
   0x5   :  { %p617_p2 = pnand %p615_p1, %p612_p0 }
   0x7   :  { %620 = shalt.err (!%p617_p2)
}
   0x8   :  { %s621_s27 = scalar_lea.vmem %s18_s19, 256  ;;  %p626_p4 = scmp.lt.s32.totalorder %s18_s19, %s18_s19 }
   0x9   :  { %p622_p3 = scmp.ne.s32.totalorder %s18_s19, %s621_s27  ;;  %p627_p5 = scmp.lt.s32.totalorder %s621_s27, %s621_s27 }
   0xb   :  { %p628_p6 = por %p627_p5, %p626_p4 }
   0xd   :  { %p629_p7 = pnand %p628_p6, %p622_p3 }
   0xf   :  { %632 = shalt.err (!%p629_p7)
}
  0x10   :  { %s660_s28 = smov 128   ;;  %s661_s29 = smov 8  }
  0x11   :  { %23 = dma.hbm_to_vmem [thread:$0]  %s852_s0, 256, %s18_s19, [#allocation3], %s660_s28, %s660_s28, %s661_s29  }
  0x12   :  { %655 = dma.done.wait [#allocation3], 256  }
  0x13   :  { %656 = vsyncadd [#allocation3], 4294967040  ;;  %v662_v0 = vmov 0   ;;  %v35_v1 = vld [vmem:[%s853_s1] sm:$0xf]  ;;  %v663_v3 = vmov 0.0   ;;  %v69_v6 = vlaneseq }
  0x14   :  { %610 = vset.pattern.permute.xlu0 %v662_v0  ;;  %v36_v2 = vld [vmem:[%s854_s2] sm:$0xf]  ;;  %164 = vmatprep.mubr.f32.mxu0 %v663_v3  ;;  %v664_v4 = vmov 839922192   ;;  %v373_v13 = vld [vmem:[#allocation2 + $0x8] sm:$0xff]  ;;  %vm95_vm0 = vcmask 1043456  }
  0x15   :  { %64 = vperm.xlu0 %610, %v35_v1   ;;  %447 = vmatprep.mubr.f32.mxu1 %v663_v3  ;;  %v67_v5 = vunpack.c.l.s4 %v664_v4  ;;  %v723_v8 = vshrl.u32 %v69_v6, 7  ;;  %v61_v12 = vld [vmem:[#allocation2] sm:$0xff]  ;;  %vm91_vm1 = vcmask 31744   ;;  %s665_s2 = smov 112   ;;  %vm177_vm2 = vcmask 916480   ;;  %s667_s13 = smov 126  }
  0x16   :  { %v37_v24 = vld [vmem:[%s855_s3] sm:$0xf]  ;;  %s666_s3 = smov 127   ;;  %vm190_vm3 = vcmask 1039360   ;;  %vm226_vm8 = vcmask 1031168   ;;  %s668_s16 = smov 124  }
  0x17   :  { %v68_v7 = vunpack.c.0.s8 %v67_v5  ;;  %v38_v53 = vld [vmem:[%s856_s4] ss:$8 sm:$0x3]  ;;  %v745_v54 = vsub.s32 0, %v723_v8  ;;  %v748_v55 = vsub.s32 1, %v723_v8  ;;  %vm250_vm12 = vcmask 1014784  }
  0x18   :  { %vm39_vm4 = vcmp.ne.f32.partialorder %v38_v53, 0.0  ;;  %s669_s19 = smov 120   ;;  %s670_s24 = smov 96  }
  0x19   :  { %77 = vperm.xlu0 %610, %v36_v2   ;;  %v71_v9 = vsub.s32 %v68_v7, %v723_v8  ;;  %v207_v56 = vsel %vm39_vm4, 1, %v662_v0  ;;  %v582_v8 = vld [vmem:[%s856_s4 + $0x1] ss:$8 sm:$0x3]  ;;  %s671_s27 = smov 64  }
  0x1a   :  { %v215_v57 = vrot.slane %v207_v56, %v748_v55  ;;  %v211_v58 = vrot.slane %v207_v56, %v745_v54  ;;  %vm42_vm7 = vcmp.ne.f32.partialorder %v582_v8, 0.0 }
  0x1c   :  { %vm217_vm5 = vcmp.eq.s32.totalorder %v215_v57, 1  ;;  %vm216_vm6 = vcmp.eq.s32.totalorder %v211_v58, 1  ;;  %v585_v58 = vld [vmem:[%s856_s4 + $0x4] ss:$8 sm:$0x3] }
  0x1d   :  { %vm51_vm4 = vcmp.ne.f32.partialorder %v585_v58, 0.0 }
  0x94   :  { %v65_v10 = vpop.permute.xlu0 %64 }
  0x95   :  { %v72_v11 = vrot.slane %v65_v10, %v71_v9 }
  0x97   :  { %v74_v15 = vmul.f32 %v72_v11, %v61_v12  ;;  %v374_v16 = vmul.f32 %v373_v13, %v72_v11 }
  0x98   :  { %v78_v14 = vpop.permute.xlu0 %77 }
  0x99   :  { %v85_v17 = vrot.slane %v78_v14, %v71_v9  ;;  %v231_v9 = vsel %vm42_vm7, 1, %v662_v0 }
  0x9a   :  { %v239_v10 = vrot.slane %v231_v9, %v748_v55  ;;  %v235_v11 = vrot.slane %v231_v9, %v745_v54 }
  0x9b   :  { %v87_v18 = vadd.f32 %v85_v17, %v74_v15  ;;  %v375_v19 = vadd.f32 %v374_v16, %v85_v17 }
  0x9c   :  { %vm241_vm9 = vcmp.eq.s32.totalorder %v239_v10, 1  ;;  %vm240_vm10 = vcmp.eq.s32.totalorder %v235_v11, 1  ;;  %v586_v11 = vld [vmem:[%s856_s4 + $0x5] ss:$8 sm:$0x3] }
  0x9d   :  { %v88_v20 = vmax.f32 %v87_v18, 0.0  ;;  %v376_v21 = vmax.f32 %v375_v19, 0.0  ;;  %vm54_vm7 = vcmp.ne.f32.partialorder %v586_v11, 0.0 }
  0x9f   :  { %v90_v22 = vcombine.high %v88_v20, %v88_v20  ;;  %v378_v23 = vcombine.high %v376_v21, %v376_v21 }
  0xa1   :  { %589 = vmatprep.subr.msk.mxu0 %vm95_vm0, %v90_v22  ;;  %592 = vmatprep.subr.msk.mxu1 %vm95_vm0, %v378_v23 }
  0xa2   :  { %590 = vmatpush1.msk.msra.mxu0 %vm95_vm0, %v88_v20  ;;  %593 = vmatpush1.msk.msra.mxu1 %vm95_vm0, %v376_v21  ;;  %vm274_vm0 = vcmask 982016  }
  0xa3   :  { %591 = vmatmul.mubr.msk.f32.vlgmr.msra.gmra.mrb[0].mxu0 %vm91_vm1, %v37_v24  ;;  %594 = vmatmul.mubr.msk.f32.vlgmr.msra.gmra.mrb[0].mxu1 %vm91_vm1, %v37_v24  ;;  %v583_v24 = vld [vmem:[%s856_s4 + $0x2] ss:$8 sm:$0x3] }
  0xa4   :  { %vm45_vm11 = vcmp.ne.f32.partialorder %v583_v24, 0.0 }
 0x176   :  { %v166_v25 = vpop.f32.mrb[0].mxu0  ;;  %v449_v26 = vpop.f32.mrb[0].mxu1 }
 0x177   :  { %173 = vrot.lane.b32.xlu1 %v166_v25, %s665_s2  ;;  %v168_v27 = vpop.f32.mrb[1].mxu0  ;;  %v451_v28 = vpop.f32.mrb[1].mxu1  ;;  %456 = vrot.lane.b32.xlu0 %v449_v26, %s665_s2 }
 0x17b   :  { %175 = vrot.lane.b32.xlu1 %v168_v27, %s665_s2 }
 0x17f   :  { %458 = vrot.lane.b32.xlu1 %v451_v28, %s665_s2 }
 0x1e9   :  { %v174_v29 = vpop.permute.xlu1 %173  ;;  %v457_v35 = vpop.permute.xlu0 %456 }
 0x1ed   :  { %v176_v30 = vpop.permute.xlu1 %175 }
 0x1ee   :  { %v178_v31 = vsel %vm177_vm2, %v174_v29, %v176_v30  ;;  %v181_v32 = vsel %vm177_vm2, %v176_v30, 0.0 }
 0x1ef   :  { %v182_v33 = vmax.f32 %v166_v25, %v178_v31  ;;  %v183_v34 = vmax.f32 %v168_v27, %v181_v32  ;;  %v255_v25 = vsel %vm45_vm11, 1, %v662_v0 }
 0x1f0   :  { %v259_v27 = vrot.slane %v255_v25, %v745_v54 }
 0x1f1   :  { %188 = vrot.lane.b32.xlu1 %v183_v34, %s666_s3  ;;  %186 = vrot.lane.b32.xlu0 %v182_v33, %s666_s3  ;;  %v459_v36 = vpop.permute.xlu1 %458 }
 0x1f2   :  { %v460_v37 = vsel %vm177_vm2, %v457_v35, %v459_v36  ;;  %v463_v38 = vsel %vm177_vm2, %v459_v36, 0.0  ;;  %vm264_vm14 = vcmp.eq.s32.totalorder %v259_v27, 1  ;;  %v587_v27 = vld [vmem:[%s856_s4 + $0x6] ss:$8 sm:$0x3] }
 0x1f3   :  { %v464_v39 = vmax.f32 %v449_v26, %v460_v37  ;;  %v465_v40 = vmax.f32 %v451_v28, %v463_v38  ;;  %v263_v26 = vrot.slane %v255_v25, %v748_v55 }
 0x1f5   :  { %470 = vrot.lane.b32.xlu1 %v465_v40, %s666_s3  ;;  %468 = vrot.lane.b32.xlu0 %v464_v39, %s666_s3  ;;  %vm265_vm13 = vcmp.eq.s32.totalorder %v263_v26, 1 }
 0x263   :  { %v187_v41 = vpop.permute.xlu0 %186  ;;  %v189_v42 = vpop.permute.xlu1 %188 }
 0x264   :  { %v191_v43 = vsel %vm190_vm3, %v187_v41, %v189_v42  ;;  %v194_v44 = vsel %vm190_vm3, %v189_v42, 0.0 }
 0x265   :  { %v195_v45 = vmax.f32 %v182_v33, %v191_v43  ;;  %v196_v46 = vmax.f32 %v183_v34, %v194_v44 }
 0x267   :  { %v469_v47 = vpop.permute.xlu0 %468  ;;  %201 = vrot.lane.b32.xlu1 %v196_v46, %s666_s3  ;;  %199 = vrot.lane.b32.xlu0 %v195_v45, %s666_s3  ;;  %v471_v48 = vpop.permute.xlu1 %470 }
 0x268   :  { %v472_v49 = vsel %vm190_vm3, %v469_v47, %v471_v48  ;;  %v475_v50 = vsel %vm190_vm3, %v471_v48, 0.0 }
 0x269   :  { %v476_v51 = vmax.f32 %v464_v39, %v472_v49  ;;  %v477_v52 = vmax.f32 %v465_v40, %v475_v50  ;;  %v584_v40 = vld [vmem:[%s856_s4 + $0x3] ss:$8 sm:$0x3] }
 0x26a   :  { %vm48_vm15 = vcmp.ne.f32.partialorder %v584_v40, 0.0 }
 0x26b   :  { %482 = vrot.lane.b32.xlu1 %v477_v52, %s666_s3  ;;  %480 = vrot.lane.b32.xlu0 %v476_v51, %s666_s3  ;;  %v279_v41 = vsel %vm48_vm15, 1, %v662_v0 }
 0x26c   :  { %v287_v42 = vrot.slane %v279_v41, %v748_v55  ;;  %v283_v43 = vrot.slane %v279_v41, %v745_v54 }
 0x26e   :  { %vm289_vm1 = vcmp.eq.s32.totalorder %v287_v42, 1 }
 0x2d9   :  { %v200_v59 = vpop.permute.xlu0 %199  ;;  %v202_v60 = vpop.permute.xlu1 %201 }
 0x2da   :  { %v203_v61 = vsel %vm190_vm3, %v200_v59, %v202_v60  ;;  %v206_v62 = vsel %vm190_vm3, %v202_v60, 0.0  ;;  %v302_v59 = vsel %vm51_vm4, 1, %v662_v0 }
 0x2db   :  { %v219_v63 = vsel %vm217_vm5, %v206_v62, %v196_v46  ;;  %v218_v1 = vsel %vm216_vm6, %v203_v61, %v195_v45  ;;  %v310_v60 = vrot.slane %v302_v59, %v748_v55  ;;  %v306_v61 = vrot.slane %v302_v59, %v745_v54 }
 0x2dc   :  { %224 = vrot.lane.b32.xlu1 %v219_v63, %s667_s13  ;;  %222 = vrot.lane.b32.xlu0 %v218_v1, %s667_s13 }
 0x2dd   :  { %v481_v2 = vpop.permute.xlu0 %480  ;;  %v483_v3 = vpop.permute.xlu1 %482 }
 0x2de   :  { %v484_v4 = vsel %vm190_vm3, %v481_v2, %v483_v3  ;;  %v487_v5 = vsel %vm190_vm3, %v483_v3, 0.0  ;;  %vm288_vm3 = vcmp.eq.s32.totalorder %v283_v43, 1 }
 0x2df   :  { %v489_v6 = vsel %vm217_vm5, %v487_v5, %v477_v52  ;;  %v488_v7 = vsel %vm216_vm6, %v484_v4, %v476_v51  ;;  %vm312_vm5 = vcmp.eq.s32.totalorder %v310_v60, 1  ;;  %vm311_vm6 = vcmp.eq.s32.totalorder %v306_v61, 1 }
 0x2e0   :  { %494 = vrot.lane.b32.xlu1 %v489_v6, %s667_s13  ;;  %492 = vrot.lane.b32.xlu0 %v488_v7, %s667_s13 }
 0x34e   :  { %v223_v12 = vpop.permute.xlu0 %222  ;;  %v225_v13 = vpop.permute.xlu1 %224 }
 0x34f   :  { %v227_v14 = vsel %vm226_vm8, %v223_v12, %v225_v13  ;;  %v230_v15 = vsel %vm226_vm8, %v225_v13, 0.0  ;;  %v326_v12 = vsel %vm54_vm7, 1, %v662_v0 }
 0x350   :  { %v243_v16 = vsel %vm241_vm9, %v230_v15, %v219_v63  ;;  %v242_v17 = vsel %vm240_vm10, %v227_v14, %v218_v1  ;;  %v334_v13 = vrot.slane %v326_v12, %v748_v55  ;;  %v330_v14 = vrot.slane %v326_v12, %v745_v54 }
 0x351   :  { %248 = vrot.lane.b32.xlu1 %v243_v16, %s668_s16  ;;  %246 = vrot.lane.b32.xlu0 %v242_v17, %s668_s16 }
 0x352   :  { %v493_v18 = vpop.permute.xlu0 %492  ;;  %v495_v19 = vpop.permute.xlu1 %494 }
 0x353   :  { %v496_v20 = vsel %vm226_vm8, %v493_v18, %v495_v19  ;;  %v499_v21 = vsel %vm226_vm8, %v495_v19, 0.0  ;;  %vm321_vm8 = vcmask 785408  }
 0x354   :  { %v501_v22 = vsel %vm241_vm9, %v499_v21, %v489_v6  ;;  %v500_v23 = vsel %vm240_vm10, %v496_v20, %v488_v7  ;;  %vm336_vm9 = vcmp.eq.s32.totalorder %v334_v13, 1  ;;  %vm335_vm10 = vcmp.eq.s32.totalorder %v330_v14, 1 }
 0x355   :  { %506 = vrot.lane.b32.xlu1 %v501_v22, %s668_s16  ;;  %504 = vrot.lane.b32.xlu0 %v500_v23, %s668_s16 }
 0x3c3   :  { %v247_v28 = vpop.permute.xlu0 %246  ;;  %v249_v29 = vpop.permute.xlu1 %248 }
 0x3c4   :  { %v251_v30 = vsel %vm250_vm12, %v247_v28, %v249_v29  ;;  %v254_v31 = vsel %vm250_vm12, %v249_v29, 0.0  ;;  %v588_v28 = vld [vmem:[%s856_s4 + $0x7] ss:$8 sm:$0x3]  ;;  %s672_s4 = smov [#allocation5]  }
 0x3c5   :  { %v267_v32 = vsel %vm265_vm13, %v254_v31, %v243_v16  ;;  %v266_v33 = vsel %vm264_vm14, %v251_v30, %v242_v17  ;;  %vm60_vm11 = vcmp.ne.f32.partialorder %v588_v28, 0.0  ;;  %s570_s7 = sshll.u32 %s672_s4, 4  ;;  %s571_s7 = int_to_ptr.vmem [resolvable:$true] %s570_s7 }
 0x3c6   :  { %272 = vrot.lane.b32.xlu1 %v267_v32, %s669_s19  ;;  %270 = vrot.lane.b32.xlu0 %v266_v33, %s669_s19  ;;  %v363_v30 = vsel %vm60_vm11, 1, %v662_v0  ;;  %s633_s8 = scalar_lea.vmem %s571_s7, 128  ;;  %p638_p9 = scmp.lt.s32.totalorder %s571_s7, %s571_s7 }
 0x3c7   :  { %v505_v34 = vpop.permute.xlu0 %504  ;;  %v507_v35 = vpop.permute.xlu1 %506  ;;  %p634_p8 = scmp.ne.s32.totalorder %s571_s7, %s633_s8  ;;  %p639_p10 = scmp.lt.s32.totalorder %s633_s8, %s633_s8 }
 0x3c8   :  { %v508_v36 = vsel %vm250_vm12, %v505_v34, %v507_v35  ;;  %v511_v37 = vsel %vm250_vm12, %v507_v35, 0.0  ;;  %vm345_vm12 = vcmask 523264  }
 0x3c9   :  { %v513_v38 = vsel %vm265_vm13, %v511_v37, %v501_v22  ;;  %v512_v39 = vsel %vm264_vm14, %v508_v36, %v500_v23  ;;  %p640_p11 = por %p639_p10, %p638_p9 }
 0x3ca   :  { %518 = vrot.lane.b32.xlu1 %v513_v38, %s669_s19  ;;  %516 = vrot.lane.b32.xlu0 %v512_v39, %s669_s19 }
 0x3cb   :  { %p641_p12 = pnand %p640_p11, %p634_p8 }
 0x438   :  { %v271_v44 = vpop.permute.xlu0 %270  ;;  %v273_v45 = vpop.permute.xlu1 %272 }
 0x439   :  { %v275_v46 = vsel %vm274_vm0, %v271_v44, %v273_v45  ;;  %v278_v47 = vsel %vm274_vm0, %v273_v45, 0.0 }
 0x43a   :  { %v291_v48 = vsel %vm289_vm1, %v278_v47, %v267_v32  ;;  %v290_v49 = vsel %vm288_vm3, %v275_v46, %v266_v33  ;;  %v367_v33 = vrot.slane %v363_v30, %v745_v54 }
 0x43b   :  { %296 = vrot.lane.b32.xlu1 %v291_v48, %s665_s2  ;;  %294 = vrot.lane.b32.xlu0 %v290_v49, %s665_s2 }
 0x43c   :  { %v517_v50 = vpop.permute.xlu0 %516  ;;  %v519_v51 = vpop.permute.xlu1 %518  ;;  %vm818_vm15 = vcmp.eq.s32.totalorder %v367_v33, 1 }
 0x43d   :  { %v520_v52 = vsel %vm274_vm0, %v517_v50, %v519_v51  ;;  %v523_v53 = vsel %vm274_vm0, %v519_v51, 0.0  ;;  %vm370_vm0 = vcmask 519168  }
 0x43e   :  { %v525_v56 = vsel %vm289_vm1, %v523_v53, %v513_v38  ;;  %v524_v57 = vsel %vm288_vm3, %v520_v52, %v512_v39 }
 0x43f   :  { %530 = vrot.lane.b32.xlu1 %v525_v56, %s665_s2  ;;  %528 = vrot.lane.b32.xlu0 %v524_v57, %s665_s2 }
 0x4ad   :  { %v295_v62 = vpop.permute.xlu0 %294  ;;  %v297_v63 = vpop.permute.xlu1 %296 }
 0x4ae   :  { %v298_v1 = vsel %vm177_vm2, %v295_v62, %v297_v63  ;;  %v301_v2 = vsel %vm177_vm2, %v297_v63, 0.0 }
 0x4af   :  { %v314_v3 = vsel %vm312_vm5, %v301_v2, %v291_v48  ;;  %v313_v4 = vsel %vm311_vm6, %v298_v1, %v290_v49 }
 0x4b0   :  { %319 = vrot.lane.b32.xlu1 %v314_v3, %s670_s24  ;;  %317 = vrot.lane.b32.xlu0 %v313_v4, %s670_s24 }
 0x4b1   :  { %v529_v5 = vpop.permute.xlu0 %528  ;;  %v531_v6 = vpop.permute.xlu1 %530 }
 0x4b2   :  { %v532_v7 = vsel %vm177_vm2, %v529_v5, %v531_v6  ;;  %v535_v8 = vsel %vm177_vm2, %v531_v6, 0.0  ;;  %vm57_vm2 = vcmp.ne.f32.partialorder %v587_v27, 0.0 }
 0x4b3   :  { %v537_v9 = vsel %vm312_vm5, %v535_v8, %v525_v56  ;;  %v536_v10 = vsel %vm311_vm6, %v532_v7, %v524_v57  ;;  %v350_v29 = vsel %vm57_vm2, 1, %v662_v0 }
 0x4b4   :  { %542 = vrot.lane.b32.xlu1 %v537_v9, %s670_s24  ;;  %540 = vrot.lane.b32.xlu0 %v536_v10, %s670_s24  ;;  %v354_v31 = vrot.slane %v350_v29, %v745_v54  ;;  %v358_v32 = vrot.slane %v350_v29, %v748_v55 }
 0x4b6   :  { %vm810_vm13 = vcmp.eq.s32.totalorder %v354_v31, 1  ;;  %vm814_vm14 = vcmp.eq.s32.totalorder %v358_v32, 1 }
 0x522   :  { %v318_v15 = vpop.permute.xlu0 %317  ;;  %v320_v16 = vpop.permute.xlu1 %319 }
 0x523   :  { %v322_v17 = vsel %vm321_vm8, %v318_v15, %v320_v16  ;;  %v325_v18 = vsel %vm321_vm8, %v320_v16, 0.0 }
 0x524   :  { %v338_v19 = vsel %vm336_vm9, %v325_v18, %v314_v3  ;;  %v337_v20 = vsel %vm335_vm10, %v322_v17, %v313_v4 }
 0x525   :  { %343 = vrot.lane.b32.xlu1 %v338_v19, %s671_s27  ;;  %341 = vrot.lane.b32.xlu0 %v337_v20, %s671_s27 }
 0x526   :  { %v541_v21 = vpop.permute.xlu0 %540  ;;  %v543_v22 = vpop.permute.xlu1 %542 }
 0x527   :  { %v544_v23 = vsel %vm321_vm8, %v541_v21, %v543_v22  ;;  %v547_v24 = vsel %vm321_vm8, %v543_v22, 0.0 }
 0x528   :  { %v549_v25 = vsel %vm336_vm9, %v547_v24, %v537_v9  ;;  %v548_v26 = vsel %vm335_vm10, %v544_v23, %v536_v10 }
 0x529   :  { %554 = vrot.lane.b32.xlu1 %v549_v25, %s671_s27  ;;  %552 = vrot.lane.b32.xlu0 %v548_v26, %s671_s27 }
 0x597   :  { %v342_v36 = vpop.permute.xlu0 %341  ;;  %v344_v0 = vpop.permute.xlu1 %343 }
 0x598   :  { %v346_v38 = vsel %vm345_vm12, %v342_v36, %v344_v0  ;;  %v349_v55 = vsel %vm345_vm12, %v344_v0, 0.0 }
 0x599   :  { %v361_v54 = vsel %vm810_vm13, %v346_v38, %v337_v20  ;;  %v362_v39 = vsel %vm814_vm14, %v349_v55, %v338_v19 }
 0x59a   :  { %v369_v40 = vsel %vm818_vm15, %v362_v39, %v361_v54 }
 0x59b   :  { %v553_v41 = vpop.permute.xlu0 %552  ;;  %v555_v42 = vpop.permute.xlu1 %554  ;;  %371 = vst.msk [vmem:[#allocation5] sm:$0xf] %vm370_vm0, %v369_v40 }
 0x59c   :  { %v556_v43 = vsel %vm345_vm12, %v553_v41, %v555_v42  ;;  %v559_v44 = vsel %vm345_vm12, %v555_v42, 0.0 }
 0x59d   :  { %v560_v45 = vsel %vm810_vm13, %v556_v43, %v548_v26  ;;  %v561_v46 = vsel %vm814_vm14, %v559_v44, %v549_v25 }
 0x59e   :  { %v562_v47 = vsel %vm818_vm15, %v561_v46, %v560_v45 }
 0x59f   :  { %564 = vst.msk [vmem:[#allocation5 + $0x4] sm:$0xf] %vm370_vm0, %v562_v47 }
 0x5a0   :  { %644 = shalt.err (!%p641_p12)
}
 0x5a1   :  { %s645_s0 = scalar_lea.hbm %s857_s5, 128 }
 0x5a2   :  { %p646_p13 = scmp.ne.s32.totalorder %s857_s5, %s645_s0  ;;  %p649_p0 = scmp.lt.u32.totalorder %s645_s0, %s857_s5 }
 0x5a4   :  { %p651_p1 = pnand %p649_p0, %p646_p13 }
 0x5a6   :  { %654 = shalt.err (!%p651_p1)
}
 0x5a7   :  { %s673_s12 = smov 4  }
 0x5a8   :  { %576 = dma.vmem_to_hbm [thread:$0]  %s571_s7, 128, %s857_s5, [#allocation4], %s671_s27, %s671_s27, %s673_s12  }
 0x5a9   :  { %657 = dma.done.wait [#allocation4], 128  }
 0x5aa   :  { %658 = vsyncadd [#allocation4], 4294967168 }
 0x5ab   :  { %580 = vsyncpa [#allocation3], 1 }
 0x5ac   :  { %581 = vsyncpa [#allocation4], 1 }

</bundles_post_ra>
